<compile_context>
chip_gen: v5e
topology: v5e:2x2
jax: 0.10.0
libtpu: 0.0.40
codegen_flags: <defaults>
</compile_context>

<pallas_src>
import math
from functools import partial

import jax
import jax.numpy as jnp
from jax import lax
from jax.experimental import pallas as pl
from jax.experimental.pallas import tpu as pltpu


# --------------------------- q/k/v projection kernel --------------------------- #

def _qkv_proj_kernel(q_ref, k_ref, v_ref, w_ref, b_ref, y_ref, *, n_batch):
    """Folded (external Linear ∘ MHA in-proj) q/k/v projections for one L tile.

    q/k/v blocks: (tl, N, E) in the module's native (seq, batch, embed) layout.
    The (L, N) -> (N, L) relayout needed by the attention stage is fused into the
    stores (per-batch static slices) -- no host transpose, no extra HBM round trip.
    """
    for p, x_ref in enumerate((q_ref, k_ref, v_ref)):        # static unroll (3)
        w = w_ref[p]                                         # (E, E)  bf16
        b = b_ref[p]                                         # (1, E)  f32
        for n in range(n_batch):                             # static unroll (small N)
            x = x_ref[:, n, :].astype(jnp.bfloat16)          # (tl, E) bf16 MXU input
            acc = jnp.dot(x, w, preferred_element_type=jnp.float32) + b
            y_ref[p, n] = acc.astype(y_ref.dtype)            # -> (3, N, L, E) slab


# ------------------------- flash attention kernel ------------------------- #

def _attn_kernel(q_ref, k_ref, v_ref, o_ref, m_sc, l_sc, acc_sc, *, num_heads):
    """Online-softmax attention for one (batch, q-tile) over KV tiles.

    Blocks: q (1,1,tq,E) bf16, k/v (1,1,tkv,E) bf16, o (1,tq,E) bf16.
    Scratch: m/l (H,tq,1) f32, acc (H,tq,hd) f32.
    The 1/sqrt(hd) scale is already folded into the q projection weights.
    """
    kv = pl.program_id(2)

    @pl.when(kv == 0)
    def _init():
        m_sc[...] = jnp.full(m_sc.shape, -jnp.inf, jnp.float32)
        l_sc[...] = jnp.zeros(l_sc.shape, jnp.float32)
        acc_sc[...] = jnp.zeros(acc_sc.shape, jnp.float32)

    E = q_ref.shape[-1]
    hd = E // num_heads
    q = q_ref[0, 0]                                          # (tq,  E) bf16
    k = k_ref[0, 0]                                          # (tkv, E) bf16
    v = v_ref[0, 0]                                          # (tkv, E) bf16

    for h in range(num_heads):                               # static unroll (small H)
        sl = slice(h * hd, (h + 1) * hd)
        # q k^T via last-dim contraction -- no materialized K^T; f32 scores.
        s = lax.dot_general(q[:, sl], k[:, sl], (((1,), (1,)), ((), ())),
                            preferred_element_type=jnp.float32)       # (tq, tkv)
        m_prev = m_sc[h]                                               # (tq, 1)
        m_new = jnp.maximum(m_prev, jnp.max(s, axis=-1, keepdims=True))
        alpha = jnp.exp(m_prev - m_new)                                # (tq, 1)
        p = jnp.exp(s - m_new)                                         # (tq, tkv) f32
        l_sc[h] = alpha * l_sc[h] + jnp.sum(p, axis=-1, keepdims=True)
        acc_sc[h] = alpha * acc_sc[h] + jnp.dot(
            p.astype(v.dtype), v[:, sl], preferred_element_type=jnp.float32)
        m_sc[h] = m_new

    @pl.when(kv == pl.num_programs(2) - 1)
    def _finalize():
        for h in range(num_heads):
            sl = slice(h * hd, (h + 1) * hd)
            inv = pl.reciprocal(l_sc[h], approx=True)        # EUP slot, frees VALU
            # normalize AFTER the PV matmul (hd-wide, not S-wide) and store the
            # head slice directly -- no lane concatenate, one head live at a time.
            o_ref[0, :, sl] = (acc_sc[h] * inv).astype(o_ref.dtype)


# ----------------------------- out-projection kernel ----------------------------- #

def _out_proj_kernel(a_ref, w_ref, b_ref, o_ref, *, n_batch):
    """Out-projection for one L tile; writes the final (L, N, E) layout directly
    (the (N, L) -> (L, N) relayout is fused into the stores)."""
    w = w_ref[...]                                           # (E, E) bf16
    b = b_ref[...]                                           # (1, E) f32
    for n in range(n_batch):                                 # static unroll (small N)
        acc = jnp.dot(a_ref[n], w, preferred_element_type=jnp.float32) + b
        o_ref[:, n, :] = acc.astype(o_ref.dtype)


# ------------------------------ module wrapper ------------------------------ #

def init_params(key, d_model):
    """Deterministic synthetic parameters (PyTorch (out, in) weight layout)."""
    ks = jax.random.split(key, 16)
    s = 1.0 / math.sqrt(d_model)

    def w(k):
        return jax.random.uniform(k, (d_model, d_model), jnp.float32, -s, s)

    def b(k):
        return jax.random.uniform(k, (d_model,), jnp.float32, -s, s)

    return {
        # external q/k/v Linears
        "wq": w(ks[0]), "bq": b(ks[1]),
        "wk": w(ks[2]), "bk": b(ks[3]),
        "wv": w(ks[4]), "bv": b(ks[5]),
        # nn.MultiheadAttention in-proj (split into q/k/v pieces)
        "wiq": w(ks[6]), "biq": b(ks[7]),
        "wik": w(ks[8]), "bik": b(ks[9]),
        "wiv": w(ks[10]), "biv": b(ks[11]),
        # nn.MultiheadAttention out-proj
        "wo": w(ks[12]), "bo": b(ks[13]),
    }


def prepare_params(params, *, num_heads):
    """Fold the external q/k/v Linears into the MHA in-proj (two cascaded Linears
    compose exactly), fold the 1/sqrt(hd) softmax scale into the q projection,
    pre-transpose every weight to (Ein, Eout) once, and store weights as bf16
    (biases stay f32 and are added post-accumulation)."""
    d_model = params["wq"].shape[0]
    hd = d_model // num_heads
    scale = 1.0 / math.sqrt(hd)

    def compose(w_outer, b_outer, w_inner, b_inner):
        # y = (x @ w_inner^T + b_inner) @ w_outer^T + b_outer   (done in f32)
        w = w_outer @ w_inner                    # still (out, in) layout
        b = w_outer @ b_inner + b_outer
        return w.T, b                            # transposed once, at prep time

    wq_t, bq = compose(params["wiq"], params["biq"], params["wq"], params["bq"])
    wk_t, bk = compose(params["wik"], params["bik"], params["wk"], params["bk"])
    wv_t, bv = compose(params["wiv"], params["biv"], params["wv"], params["bv"])
    wq_t, bq = wq_t * scale, bq * scale          # softmax scale folded into q proj

    return {
        "w_qkv_t": jnp.stack([wq_t, wk_t, wv_t]).astype(jnp.bfloat16),    # (3, E, E)
        "b_qkv": jnp.stack([bq, bk, bv])[:, None, :].astype(jnp.float32), # (3, 1, E)
        "w_o_t": params["wo"].T.astype(jnp.bfloat16),                     # (E, E)
        "b_o": params["bo"].reshape(1, -1).astype(jnp.float32),           # (1, E)
    }


def multi_head_attention(q, k, v, prepared, *, num_heads):
    L, N, E = q.shape
    assert q.shape == k.shape == v.shape, "self / same-length attention only"
    assert E % num_heads == 0
    hd = E // num_heads

    # Tile sizes: (8,128)-compatible (tile divides L and is a multiple of 8, or == L).
    tl = L if L <= 256 else 256          # projection L tile
    tq = L if L <= 256 else 256          # attention query tile
    tkv = L if L <= 512 else 512         # attention KV tile (>=256 keeps MXU cols full)
    assert L % tl == 0 and L % tq == 0 and L % tkv == 0

    # ---- 1) folded q/k/v projection; (L,N)->(N,L) relayout fused into stores ---- #
    y = pl.pallas_call(
        partial(_qkv_proj_kernel, n_batch=N),
        out_shape=jax.ShapeDtypeStruct((3, N, L, E), jnp.bfloat16),
        grid=(L // tl,),
        in_specs=[
            pl.BlockSpec((tl, N, E), lambda l: (l, 0, 0)),   # q  (native layout)
            pl.BlockSpec((tl, N, E), lambda l: (l, 0, 0)),   # k
            pl.BlockSpec((tl, N, E), lambda l: (l, 0, 0)),   # v
            pl.BlockSpec((3, E, E), lambda l: (0, 0, 0)),    # folded weights (bf16)
            pl.BlockSpec((3, 1, E), lambda l: (0, 0, 0)),    # folded biases  (f32)
        ],
        out_specs=pl.BlockSpec((3, N, tl, E), lambda l: (0, 0, l, 0)),
        compiler_params=pltpu.CompilerParams(dimension_semantics=("parallel",)),
    )(q, k, v, prepared["w_qkv_t"], prepared["b_qkv"])

    # ---- 2) flash attention over (batch, q-tile, kv-tile) ----------------------- #
    # The same projected array is passed three times with different index_maps
    # (q / k / v slabs) -- no host-side slicing or copies.
    attn = pl.pallas_call(
        partial(_attn_kernel, num_heads=num_heads),
        out_shape=jax.ShapeDtypeStruct((N, L, E), jnp.bfloat16),
        grid=(N, L // tq, L // tkv),
        in_specs=[
            pl.BlockSpec((1, 1, tq, E), lambda n, qi, kv: (0, n, qi, 0)),
            pl.BlockSpec((1, 1, tkv, E), lambda n, qi, kv: (1, n, kv, 0)),
            pl.BlockSpec((1, 1, tkv, E), lambda n, qi, kv: (2, n, kv, 0)),
        ],
        out_specs=pl.BlockSpec((1, tq, E), lambda n, qi, kv: (n, qi, 0)),
        scratch_shapes=[
            pltpu.VMEM((num_heads, tq, 1), jnp.float32),    # running max
            pltpu.VMEM((num_heads, tq, 1), jnp.float32),    # running denom
            pltpu.VMEM((num_heads, tq, hd), jnp.float32),   # running PV accumulator
        ],
        compiler_params=pltpu.CompilerParams(
            dimension_semantics=("parallel", "parallel", "arbitrary")),
    )(y, y, y)                                               # (N, L, E) bf16

    # ---- 3) out-projection; writes the final (L, N, E) layout directly ---------- #
    out = pl.pallas_call(
        partial(_out_proj_kernel, n_batch=N),
        out_shape=jax.ShapeDtypeStruct((L, N, E), q.dtype),
        grid=(L // tl,),
        in_specs=[
            pl.BlockSpec((N, tl, E), lambda l: (0, l, 0)),
            pl.BlockSpec((E, E), lambda l: (0, 0)),
            pl.BlockSpec((1, E), lambda l: (0, 0)),
        ],
        out_specs=pl.BlockSpec((tl, N, E), lambda l: (l, 0, 0)),
        compiler_params=pltpu.CompilerParams(dimension_semantics=("parallel",)),
    )(attn, prepared["w_o_t"], prepared["b_o"])
    return out                                               # (L, N, E)


# --------------------------------- reference -------------------------------- #

def _reference(q, k, v, params, num_heads):
    L, N, E = q.shape
    S = k.shape[0]
    hd = E // num_heads

    def lin(x, w, b):
        return x @ w.T + b

    q1 = lin(q, params["wq"], params["bq"])
    k1 = lin(k, params["wk"], params["bk"])
    v1 = lin(v, params["wv"], params["bv"])
    qp = lin(q1, params["wiq"], params["biq"])
    kp = lin(k1, params["wik"], params["bik"])
    vp = lin(v1, params["wiv"], params["biv"])

    def split(x, T):
        return x.reshape(T, N, num_heads, hd).transpose(1, 2, 0, 3)

    qh, kh, vh = split(qp, L), split(kp, S), split(vp, S)
    s = jnp.einsum("nhld,nhsd->nhls", qh, kh) / math.sqrt(hd)
    p = jax.nn.softmax(s, axis=-1)
    o = jnp.einsum("nhls,nhsd->nhld", p, vh)          # (N, H, L, hd)
    o = o.transpose(2, 0, 1, 3).reshape(L, N, E)
    return lin(o, params["wo"], params["bo"])


# ----------------------------------- main ----------------------------------- #

if __name__ == "__main__":
    L, N, d_model, num_heads = 8, 2, 32, 4

    key = jax.random.PRNGKey(0)
    kq, kk, kv, kp = jax.random.split(key, 4)
    q = jax.random.normal(kq, (L, N, d_model), jnp.float32)
    k = jax.random.normal(kk, (L, N, d_model), jnp.float32)
    v = jax.random.normal(kv, (L, N, d_model), jnp.float32)
    params = init_params(kp, d_model)
    prepared = prepare_params(params, num_heads=num_heads)

    fwd = jax.jit(multi_head_attention, static_argnames=("num_heads",))
    out = fwd(q, k, v, prepared, num_heads=num_heads)
    out = jax.block_until_ready(out)

    ref = _reference(q, k, v, params, num_heads)
    assert out.shape == (L, N, d_model)
    # bf16 MXU inputs (f32 accumulation) + approximate-reciprocal softmax vs an exact
    # f32 reference: tolerance loosened accordingly (observed error << 5e-2 here).
    assert jnp.allclose(out, ref, atol=5e-2, rtol=5e-2), "mismatch vs JAX reference"

    print("KERNEL_OK")
</pallas_src>

<mosaic_0001>
module attributes {stable_mosaic.version = 11 : i64} {
  func.func @_out_proj_kernel(%arg0: i32, %arg1: memref<2x8x32xbf16, #tpu.memory_space<vmem>>, %arg2: memref<32x32xbf16, #tpu.memory_space<vmem>>, %arg3: memref<1x32xf32, #tpu.memory_space<vmem>>, %arg4: memref<8x2x32xf32, #tpu.memory_space<vmem>>) attributes {dimension_semantics = [#tpu.dimension_semantics<parallel>], iteration_bounds = array<i64: 1>, scalar_prefetch = 0 : i64, scratch_operands = 0 : i64, tpu.core_type = #tpu.core_type<tc>, window_params = [{transform_indices = @transform_0, window_bounds = array<i64: 2, 8, 32>}, {pipeline_mode = #tpu.pipeline_mode<synchronous>, transform_indices = @transform_1, window_bounds = array<i64: 32, 32>}, {pipeline_mode = #tpu.pipeline_mode<synchronous>, transform_indices = @transform_2, window_bounds = array<i64: 1, 32>}, {transform_indices = @transform_3, window_bounds = array<i64: 8, 2, 32>}]} {
    %c0 = arith.constant 0 : index
    %c0_0 = arith.constant 0 : index
    %0 = vector.load %arg2[%c0, %c0_0] : memref<32x32xbf16, #tpu.memory_space<vmem>>, vector<32x32xbf16>
    %c0_1 = arith.constant 0 : index
    %c0_2 = arith.constant 0 : index
    %1 = vector.load %arg3[%c0_1, %c0_2] : memref<1x32xf32, #tpu.memory_space<vmem>>, vector<1x32xf32>
    %c0_3 = arith.constant 0 : index
    %c0_4 = arith.constant 0 : index
    %c0_5 = arith.constant 0 : index
    %2 = vector.load %arg1[%c0_3, %c0_4, %c0_5] : memref<2x8x32xbf16, #tpu.memory_space<vmem>>, vector<1x8x32xbf16>
    %3 = vector.shape_cast %2 : vector<1x8x32xbf16> to vector<8x32xbf16>
    %cst = arith.constant dense<0.000000e+00> : vector<8x32xf32>
    %4 = tpu.matmul %3, %0, %cst {dimension_numbers = #tpu.dot_dimension_numbers<[1], [0], [0], [1], [0, 0, 1, 1], [], []>} : vector<8x32xbf16>, vector<32x32xbf16>, vector<8x32xf32> -> vector<8x32xf32>
    %5 = vector.broadcast %1 : vector<1x32xf32> to vector<8x32xf32>
    %6 = arith.addf %4, %5 : vector<8x32xf32>
    %c0_6 = arith.constant 0 : index
    %c0_7 = arith.constant 0 : index
    %c0_8 = arith.constant 0 : index
    %7 = vector.load %arg4[%c0_6, %c0_7, %c0_8] : memref<8x2x32xf32, #tpu.memory_space<vmem>>, vector<8x1x32xf32>
    %8 = vector.shape_cast %7 : vector<8x1x32xf32> to vector<8x32xf32>
    %9 = vector.shape_cast %6 : vector<8x32xf32> to vector<8x1x32xf32>
    tpu.vector_store %arg4[%c0_6, %c0_7, %c0_8], %9 {strides = array<i32>} : memref<8x2x32xf32, #tpu.memory_space<vmem>>, vector<8x1x32xf32>,
    %c1 = arith.constant 1 : index
    %c0_9 = arith.constant 0 : index
    %c0_10 = arith.constant 0 : index
    %10 = vector.load %arg1[%c1, %c0_9, %c0_10] : memref<2x8x32xbf16, #tpu.memory_space<vmem>>, vector<1x8x32xbf16>
    %11 = vector.shape_cast %10 : vector<1x8x32xbf16> to vector<8x32xbf16>
    %cst_11 = arith.constant dense<0.000000e+00> : vector<8x32xf32>
    %12 = tpu.matmul %11, %0, %cst_11 {dimension_numbers = #tpu.dot_dimension_numbers<[1], [0], [0], [1], [0, 0, 1, 1], [], []>} : vector<8x32xbf16>, vector<32x32xbf16>, vector<8x32xf32> -> vector<8x32xf32>
    %13 = vector.broadcast %1 : vector<1x32xf32> to vector<8x32xf32>
    %14 = arith.addf %12, %13 : vector<8x32xf32>
    %c0_12 = arith.constant 0 : index
    %c1_13 = arith.constant 1 : index
    %c0_14 = arith.constant 0 : index
    %15 = vector.load %arg4[%c0_12, %c1_13, %c0_14] : memref<8x2x32xf32, #tpu.memory_space<vmem>>, vector<8x1x32xf32>
    %16 = vector.shape_cast %15 : vector<8x1x32xf32> to vector<8x32xf32>
    %17 = vector.shape_cast %14 : vector<8x32xf32> to vector<8x1x32xf32>
    tpu.vector_store %arg4[%c0_12, %c1_13, %c0_14], %17 {strides = array<i32>} : memref<8x2x32xf32, #tpu.memory_space<vmem>>, vector<8x1x32xf32>,
    return
  }
  func.func @transform_0(%arg0: i32) -> (i32, i32, i32) {
    %c0_i32 = arith.constant 0 : i32
    %c0_i32_0 = arith.constant 0 : i32
    %c0_i32_1 = arith.constant 0 : i32
    return %c0_i32, %arg0, %c0_i32_0 : i32, i32, i32
  }
  func.func @transform_1(%arg0: i32) -> (i32, i32) {
    %c0_i32 = arith.constant 0 : i32
    %c0_i32_0 = arith.constant 0 : i32
    %c0_i32_1 = arith.constant 0 : i32
    return %c0_i32, %c0_i32_0 : i32, i32
  }
  func.func @transform_2(%arg0: i32) -> (i32, i32) {
    %c0_i32 = arith.constant 0 : i32
    %c0_i32_0 = arith.constant 0 : i32
    %c0_i32_1 = arith.constant 0 : i32
    return %c0_i32, %c0_i32_0 : i32, i32
  }
  func.func @transform_3(%arg0: i32) -> (i32, i32, i32) {
    %c0_i32 = arith.constant 0 : i32
    %c0_i32_0 = arith.constant 0 : i32
    %c0_i32_1 = arith.constant 0 : i32
    return %arg0, %c0_i32, %c0_i32_0 : i32, i32, i32
  }
}

module attributes {stable_mosaic.version = 11 : i64} {
  func.func @_qkv_proj_kernel(%arg0: i32, %arg1: memref<8x2x32xf32, #tpu.memory_space<vmem>>, %arg2: memref<8x2x32xf32, #tpu.memory_space<vmem>>, %arg3: memref<8x2x32xf32, #tpu.memory_space<vmem>>, %arg4: memref<3x32x32xbf16, #tpu.memory_space<vmem>>, %arg5: memref<3x1x32xf32, #tpu.memory_space<vmem>>, %arg6: memref<3x2x8x32xbf16, #tpu.memory_space<vmem>>) attributes {dimension_semantics = [#tpu.dimension_semantics<parallel>], iteration_bounds = array<i64: 1>, scalar_prefetch = 0 : i64, scratch_operands = 0 : i64, tpu.core_type = #tpu.core_type<tc>, window_params = [{transform_indices = @transform_0, window_bounds = array<i64: 8, 2, 32>}, {transform_indices = @transform_1, window_bounds = array<i64: 8, 2, 32>}, {transform_indices = @transform_2, window_bounds = array<i64: 8, 2, 32>}, {pipeline_mode = #tpu.pipeline_mode<synchronous>, transform_indices = @transform_3, window_bounds = array<i64: 3, 32, 32>}, {pipeline_mode = #tpu.pipeline_mode<synchronous>, transform_indices = @transform_4, window_bounds = array<i64: 3, 1, 32>}, {transform_indices = @transform_5, window_bounds = array<i64: 3, 2, 8, 32>}]} {
    %c0 = arith.constant 0 : index
    %c0_0 = arith.constant 0 : index
    %c0_1 = arith.constant 0 : index
    %0 = vector.load %arg4[%c0, %c0_0, %c0_1] : memref<3x32x32xbf16, #tpu.memory_space<vmem>>, vector<1x32x32xbf16>
    %1 = vector.shape_cast %0 : vector<1x32x32xbf16> to vector<32x32xbf16>
    %c0_2 = arith.constant 0 : index
    %c0_3 = arith.constant 0 : index
    %c0_4 = arith.constant 0 : index
    %2 = vector.load %arg5[%c0_2, %c0_3, %c0_4] : memref<3x1x32xf32, #tpu.memory_space<vmem>>, vector<1x1x32xf32>
    %3 = vector.shape_cast %2 : vector<1x1x32xf32> to vector<1x32xf32>
    %c0_5 = arith.constant 0 : index
    %c0_6 = arith.constant 0 : index
    %c0_7 = arith.constant 0 : index
    %4 = vector.load %arg1[%c0_5, %c0_6, %c0_7] : memref<8x2x32xf32, #tpu.memory_space<vmem>>, vector<8x1x32xf32>
    %5 = vector.shape_cast %4 : vector<8x1x32xf32> to vector<8x32xf32>
    %6 = arith.truncf %5 : vector<8x32xf32> to vector<8x32xbf16>
    %cst = arith.constant dense<0.000000e+00> : vector<8x32xf32>
    %7 = tpu.matmul %6, %1, %cst {dimension_numbers = #tpu.dot_dimension_numbers<[1], [0], [0], [1], [0, 0, 1, 1], [], []>} : vector<8x32xbf16>, vector<32x32xbf16>, vector<8x32xf32> -> vector<8x32xf32>
    %8 = vector.broadcast %3 : vector<1x32xf32> to vector<8x32xf32>
    %9 = arith.addf %7, %8 : vector<8x32xf32>
    %10 = arith.truncf %9 : vector<8x32xf32> to vector<8x32xbf16>
    %c0_8 = arith.constant 0 : index
    %c0_9 = arith.constant 0 : index
    %c0_10 = arith.constant 0 : index
    %c0_11 = arith.constant 0 : index
    %11 = vector.load %arg6[%c0_8, %c0_9, %c0_10, %c0_11] : memref<3x2x8x32xbf16, #tpu.memory_space<vmem>>, vector<1x1x8x32xbf16>
    %12 = vector.shape_cast %11 : vector<1x1x8x32xbf16> to vector<8x32xbf16>
    %13 = vector.shape_cast %10 : vector<8x32xbf16> to vector<1x1x8x32xbf16>
    tpu.vector_store %arg6[%c0_8, %c0_9, %c0_10, %c0_11], %13 {strides = array<i32>} : memref<3x2x8x32xbf16, #tpu.memory_space<vmem>>, vector<1x1x8x32xbf16>,
    %c0_12 = arith.constant 0 : index
    %c1 = arith.constant 1 : index
    %c0_13 = arith.constant 0 : index
    %14 = vector.load %arg1[%c0_12, %c1, %c0_13] : memref<8x2x32xf32, #tpu.memory_space<vmem>>, vector<8x1x32xf32>
    %15 = vector.shape_cast %14 : vector<8x1x32xf32> to vector<8x32xf32>
    %16 = arith.truncf %15 : vector<8x32xf32> to vector<8x32xbf16>
    %cst_14 = arith.constant dense<0.000000e+00> : vector<8x32xf32>
    %17 = tpu.matmul %16, %1, %cst_14 {dimension_numbers = #tpu.dot_dimension_numbers<[1], [0], [0], [1], [0, 0, 1, 1], [], []>} : vector<8x32xbf16>, vector<32x32xbf16>, vector<8x32xf32> -> vector<8x32xf32>
    %18 = vector.broadcast %3 : vector<1x32xf32> to vector<8x32xf32>
    %19 = arith.addf %17, %18 : vector<8x32xf32>
    %20 = arith.truncf %19 : vector<8x32xf32> to vector<8x32xbf16>
    %c0_15 = arith.constant 0 : index
    %c1_16 = arith.constant 1 : index
    %c0_17 = arith.constant 0 : index
    %c0_18 = arith.constant 0 : index
    %21 = vector.load %arg6[%c0_15, %c1_16, %c0_17, %c0_18] : memref<3x2x8x32xbf16, #tpu.memory_space<vmem>>, vector<1x1x8x32xbf16>
    %22 = vector.shape_cast %21 : vector<1x1x8x32xbf16> to vector<8x32xbf16>
    %23 = vector.shape_cast %20 : vector<8x32xbf16> to vector<1x1x8x32xbf16>
    tpu.vector_store %arg6[%c0_15, %c1_16, %c0_17, %c0_18], %23 {strides = array<i32>} : memref<3x2x8x32xbf16, #tpu.memory_space<vmem>>, vector<1x1x8x32xbf16>,
    %c1_19 = arith.constant 1 : index
    %c0_20 = arith.constant 0 : index
    %c0_21 = arith.constant 0 : index
    %24 = vector.load %arg4[%c1_19, %c0_20, %c0_21] : memref<3x32x32xbf16, #tpu.memory_space<vmem>>, vector<1x32x32xbf16>
    %25 = vector.shape_cast %24 : vector<1x32x32xbf16> to vector<32x32xbf16>
    %c1_22 = arith.constant 1 : index
    %c0_23 = arith.constant 0 : index
    %c0_24 = arith.constant 0 : index
    %26 = vector.load %arg5[%c1_22, %c0_23, %c0_24] : memref<3x1x32xf32, #tpu.memory_space<vmem>>, vector<1x1x32xf32>
    %27 = vector.shape_cast %26 : vector<1x1x32xf32> to vector<1x32xf32>
    %c0_25 = arith.constant 0 : index
    %c0_26 = arith.constant 0 : index
    %c0_27 = arith.constant 0 : index
    %28 = vector.load %arg2[%c0_25, %c0_26, %c0_27] : memref<8x2x32xf32, #tpu.memory_space<vmem>>, vector<8x1x32xf32>
    %29 = vector.shape_cast %28 : vector<8x1x32xf32> to vector<8x32xf32>
    %30 = arith.truncf %29 : vector<8x32xf32> to vector<8x32xbf16>
    %cst_28 = arith.constant dense<0.000000e+00> : vector<8x32xf32>
    %31 = tpu.matmul %30, %25, %cst_28 {dimension_numbers = #tpu.dot_dimension_numbers<[1], [0], [0], [1], [0, 0, 1, 1], [], []>} : vector<8x32xbf16>, vector<32x32xbf16>, vector<8x32xf32> -> vector<8x32xf32>
    %32 = vector.broadcast %27 : vector<1x32xf32> to vector<8x32xf32>
    %33 = arith.addf %31, %32 : vector<8x32xf32>
    %34 = arith.truncf %33 : vector<8x32xf32> to vector<8x32xbf16>
    %c1_29 = arith.constant 1 : index
    %c0_30 = arith.constant 0 : index
    %c0_31 = arith.constant 0 : index
    %c0_32 = arith.constant 0 : index
    %35 = vector.load %arg6[%c1_29, %c0_30, %c0_31, %c0_32] : memref<3x2x8x32xbf16, #tpu.memory_space<vmem>>, vector<1x1x8x32xbf16>
    %36 = vector.shape_cast %35 : vector<1x1x8x32xbf16> to vector<8x32xbf16>
    %37 = vector.shape_cast %34 : vector<8x32xbf16> to vector<1x1x8x32xbf16>
    tpu.vector_store %arg6[%c1_29, %c0_30, %c0_31, %c0_32], %37 {strides = array<i32>} : memref<3x2x8x32xbf16, #tpu.memory_space<vmem>>, vector<1x1x8x32xbf16>,
    %c0_33 = arith.constant 0 : index
    %c1_34 = arith.constant 1 : index
    %c0_35 = arith.constant 0 : index
    %38 = vector.load %arg2[%c0_33, %c1_34, %c0_35] : memref<8x2x32xf32, #tpu.memory_space<vmem>>, vector<8x1x32xf32>
    %39 = vector.shape_cast %38 : vector<8x1x32xf32> to vector<8x32xf32>
    %40 = arith.truncf %39 : vector<8x32xf32> to vector<8x32xbf16>
    %cst_36 = arith.constant dense<0.000000e+00> : vector<8x32xf32>
    %41 = tpu.matmul %40, %25, %cst_36 {dimension_numbers = #tpu.dot_dimension_numbers<[1], [0], [0], [1], [0, 0, 1, 1], [], []>} : vector<8x32xbf16>, vector<32x32xbf16>, vector<8x32xf32> -> vector<8x32xf32>
    %42 = vector.broadcast %27 : vector<1x32xf32> to vector<8x32xf32>
    %43 = arith.addf %41, %42 : vector<8x32xf32>
    %44 = arith.truncf %43 : vector<8x32xf32> to vector<8x32xbf16>
    %c1_37 = arith.constant 1 : index
    %c1_38 = arith.constant 1 : index
    %c0_39 = arith.constant 0 : index
    %c0_40 = arith.constant 0 : index
    %45 = vector.load %arg6[%c1_37, %c1_38, %c0_39, %c0_40] : memref<3x2x8x32xbf16, #tpu.memory_space<vmem>>, vector<1x1x8x32xbf16>
    %46 = vector.shape_cast %45 : vector<1x1x8x32xbf16> to vector<8x32xbf16>
    %47 = vector.shape_cast %44 : vector<8x32xbf16> to vector<1x1x8x32xbf16>
    tpu.vector_store %arg6[%c1_37, %c1_38, %c0_39, %c0_40], %47 {strides = array<i32>} : memref<3x2x8x32xbf16, #tpu.memory_space<vmem>>, vector<1x1x8x32xbf16>,
    %c2 = arith.constant 2 : index
    %c0_41 = arith.constant 0 : index
    %c0_42 = arith.constant 0 : index
    %48 = vector.load %arg4[%c2, %c0_41, %c0_42] : memref<3x32x32xbf16, #tpu.memory_space<vmem>>, vector<1x32x32xbf16>
    %49 = vector.shape_cast %48 : vector<1x32x32xbf16> to vector<32x32xbf16>
    %c2_43 = arith.constant 2 : index
    %c0_44 = arith.constant 0 : index
    %c0_45 = arith.constant 0 : index
    %50 = vector.load %arg5[%c2_43, %c0_44, %c0_45] : memref<3x1x32xf32, #tpu.memory_space<vmem>>, vector<1x1x32xf32>
    %51 = vector.shape_cast %50 : vector<1x1x32xf32> to vector<1x32xf32>
    %c0_46 = arith.constant 0 : index
    %c0_47 = arith.constant 0 : index
    %c0_48 = arith.constant 0 : index
    %52 = vector.load %arg3[%c0_46, %c0_47, %c0_48] : memref<8x2x32xf32, #tpu.memory_space<vmem>>, vector<8x1x32xf32>
    %53 = vector.shape_cast %52 : vector<8x1x32xf32> to vector<8x32xf32>
    %54 = arith.truncf %53 : vector<8x32xf32> to vector<8x32xbf16>
    %cst_49 = arith.constant dense<0.000000e+00> : vector<8x32xf32>
    %55 = tpu.matmul %54, %49, %cst_49 {dimension_numbers = #tpu.dot_dimension_numbers<[1], [0], [0], [1], [0, 0, 1, 1], [], []>} : vector<8x32xbf16>, vector<32x32xbf16>, vector<8x32xf32> -> vector<8x32xf32>
    %56 = vector.broadcast %51 : vector<1x32xf32> to vector<8x32xf32>
    %57 = arith.addf %55, %56 : vector<8x32xf32>
    %58 = arith.truncf %57 : vector<8x32xf32> to vector<8x32xbf16>
    %c2_50 = arith.constant 2 : index
    %c0_51 = arith.constant 0 : index
    %c0_52 = arith.constant 0 : index
    %c0_53 = arith.constant 0 : index
    %59 = vector.load %arg6[%c2_50, %c0_51, %c0_52, %c0_53] : memref<3x2x8x32xbf16, #tpu.memory_space<vmem>>, vector<1x1x8x32xbf16>
    %60 = vector.shape_cast %59 : vector<1x1x8x32xbf16> to vector<8x32xbf16>
    %61 = vector.shape_cast %58 : vector<8x32xbf16> to vector<1x1x8x32xbf16>
    tpu.vector_store %arg6[%c2_50, %c0_51, %c0_52, %c0_53], %61 {strides = array<i32>} : memref<3x2x8x32xbf16, #tpu.memory_space<vmem>>, vector<1x1x8x32xbf16>,
    %c0_54 = arith.constant 0 : index
    %c1_55 = arith.constant 1 : index
    %c0_56 = arith.constant 0 : index
    %62 = vector.load %arg3[%c0_54, %c1_55, %c0_56] : memref<8x2x32xf32, #tpu.memory_space<vmem>>, vector<8x1x32xf32>
    %63 = vector.shape_cast %62 : vector<8x1x32xf32> to vector<8x32xf32>
    %64 = arith.truncf %63 : vector<8x32xf32> to vector<8x32xbf16>
    %cst_57 = arith.constant dense<0.000000e+00> : vector<8x32xf32>
    %65 = tpu.matmul %64, %49, %cst_57 {dimension_numbers = #tpu.dot_dimension_numbers<[1], [0], [0], [1], [0, 0, 1, 1], [], []>} : vector<8x32xbf16>, vector<32x32xbf16>, vector<8x32xf32> -> vector<8x32xf32>
    %66 = vector.broadcast %51 : vector<1x32xf32> to vector<8x32xf32>
    %67 = arith.addf %65, %66 : vector<8x32xf32>
    %68 = arith.truncf %67 : vector<8x32xf32> to vector<8x32xbf16>
    %c2_58 = arith.constant 2 : index
    %c1_59 = arith.constant 1 : index
    %c0_60 = arith.constant 0 : index
    %c0_61 = arith.constant 0 : index
    %69 = vector.load %arg6[%c2_58, %c1_59, %c0_60, %c0_61] : memref<3x2x8x32xbf16, #tpu.memory_space<vmem>>, vector<1x1x8x32xbf16>
    %70 = vector.shape_cast %69 : vector<1x1x8x32xbf16> to vector<8x32xbf16>
    %71 = vector.shape_cast %68 : vector<8x32xbf16> to vector<1x1x8x32xbf16>
    tpu.vector_store %arg6[%c2_58, %c1_59, %c0_60, %c0_61], %71 {strides = array<i32>} : memref<3x2x8x32xbf16, #tpu.memory_space<vmem>>, vector<1x1x8x32xbf16>,
    return
  }
  func.func @transform_0(%arg0: i32) -> (i32, i32, i32) {
    %c0_i32 = arith.constant 0 : i32
    %c0_i32_0 = arith.constant 0 : i32
    %c0_i32_1 = arith.constant 0 : i32
    return %arg0, %c0_i32, %c0_i32_0 : i32, i32, i32
  }
  func.func @transform_1(%arg0: i32) -> (i32, i32, i32) {
    %c0_i32 = arith.constant 0 : i32
    %c0_i32_0 = arith.constant 0 : i32
    %c0_i32_1 = arith.constant 0 : i32
    return %arg0, %c0_i32, %c0_i32_0 : i32, i32, i32
  }
  func.func @transform_2(%arg0: i32) -> (i32, i32, i32) {
    %c0_i32 = arith.constant 0 : i32
    %c0_i32_0 = arith.constant 0 : i32
    %c0_i32_1 = arith.constant 0 : i32
    return %arg0, %c0_i32, %c0_i32_0 : i32, i32, i32
  }
  func.func @transform_3(%arg0: i32) -> (i32, i32, i32) {
    %c0_i32 = arith.constant 0 : i32
    %c0_i32_0 = arith.constant 0 : i32
    %c0_i32_1 = arith.constant 0 : i32
    %c0_i32_2 = arith.constant 0 : i32
    return %c0_i32, %c0_i32_0, %c0_i32_1 : i32, i32, i32
  }
  func.func @transform_4(%arg0: i32) -> (i32, i32, i32) {
    %c0_i32 = arith.constant 0 : i32
    %c0_i32_0 = arith.constant 0 : i32
    %c0_i32_1 = arith.constant 0 : i32
    %c0_i32_2 = arith.constant 0 : i32
    return %c0_i32, %c0_i32_0, %c0_i32_1 : i32, i32, i32
  }
  func.func @transform_5(%arg0: i32) -> (i32, i32, i32, i32) {
    %c0_i32 = arith.constant 0 : i32
    %c0_i32_0 = arith.constant 0 : i32
    %c0_i32_1 = arith.constant 0 : i32
    %c0_i32_2 = arith.constant 0 : i32
    return %c0_i32, %c0_i32_0, %arg0, %c0_i32_1 : i32, i32, i32, i32
  }
}

module attributes {stable_mosaic.version = 11 : i64} {
  func.func @_attn_kernel(%arg0: i32, %arg1: i32, %arg2: i32, %arg3: memref<1x1x8x32xbf16, #tpu.memory_space<vmem>>, %arg4: memref<1x1x8x32xbf16, #tpu.memory_space<vmem>>, %arg5: memref<1x1x8x32xbf16, #tpu.memory_space<vmem>>, %arg6: memref<1x8x32xbf16, #tpu.memory_space<vmem>>, %arg7: memref<4x8x1xf32, #tpu.memory_space<vmem>>, %arg8: memref<4x8x1xf32, #tpu.memory_space<vmem>>, %arg9: memref<4x8x8xf32, #tpu.memory_space<vmem>>) attributes {dimension_semantics = [#tpu.dimension_semantics<parallel>, #tpu.dimension_semantics<parallel>, #tpu.dimension_semantics<arbitrary>], iteration_bounds = array<i64: 2, 1, 1>, scalar_prefetch = 0 : i64, scratch_operands = 3 : i64, tpu.core_type = #tpu.core_type<tc>, window_params = [{transform_indices = @transform_0, window_bounds = array<i64: 1, 1, 8, 32>}, {transform_indices = @transform_1, window_bounds = array<i64: 1, 1, 8, 32>}, {transform_indices = @transform_2, window_bounds = array<i64: 1, 1, 8, 32>}, {transform_indices = @transform_3, window_bounds = array<i64: 1, 8, 32>}]} {
    %c0_i32 = arith.constant 0 : i32
    %0 = arith.cmpi eq, %arg2, %c0_i32 : i32
    %1 = arith.extui %0 : i1 to i32
    %c0_i32_0 = arith.constant 0 : i32
    %2 = arith.cmpi ne, %1, %c0_i32_0 : i32
    scf.if %2 {
      %cst_98 = arith.constant 0xFF800000 : f32
      %156 = vector.broadcast %cst_98 : f32 to vector<4x8x1xf32>
      %c0_99 = arith.constant 0 : index
      %c0_100 = arith.constant 0 : index
      %c0_101 = arith.constant 0 : index
      %157 = vector.load %arg7[%c0_99, %c0_100, %c0_101] : memref<4x8x1xf32, #tpu.memory_space<vmem>>, vector<4x8x1xf32>
      tpu.vector_store %arg7[%c0_99, %c0_100, %c0_101], %156 {strides = array<i32>} : memref<4x8x1xf32, #tpu.memory_space<vmem>>, vector<4x8x1xf32>,
      %cst_102 = arith.constant 0.000000e+00 : f32
      %158 = vector.broadcast %cst_102 : f32 to vector<4x8x1xf32>
      %c0_103 = arith.constant 0 : index
      %c0_104 = arith.constant 0 : index
      %c0_105 = arith.constant 0 : index
      %159 = vector.load %arg8[%c0_103, %c0_104, %c0_105] : memref<4x8x1xf32, #tpu.memory_space<vmem>>, vector<4x8x1xf32>
      tpu.vector_store %arg8[%c0_103, %c0_104, %c0_105], %158 {strides = array<i32>} : memref<4x8x1xf32, #tpu.memory_space<vmem>>, vector<4x8x1xf32>,
      %cst_106 = arith.constant 0.000000e+00 : f32
      %160 = vector.broadcast %cst_106 : f32 to vector<4x8x8xf32>
      %c0_107 = arith.constant 0 : index
      %c0_108 = arith.constant 0 : index
      %c0_109 = arith.constant 0 : index
      %161 = vector.load %arg9[%c0_107, %c0_108, %c0_109] : memref<4x8x8xf32, #tpu.memory_space<vmem>>, vector<4x8x8xf32>
      tpu.vector_store %arg9[%c0_107, %c0_108, %c0_109], %160 {strides = array<i32>} : memref<4x8x8xf32, #tpu.memory_space<vmem>>, vector<4x8x8xf32>,
    } else {
    }
    %c0 = arith.constant 0 : index
    %c0_1 = arith.constant 0 : index
    %c0_2 = arith.constant 0 : index
    %c0_3 = arith.constant 0 : index
    %3 = vector.load %arg3[%c0, %c0_1, %c0_2, %c0_3] : memref<1x1x8x32xbf16, #tpu.memory_space<vmem>>, vector<1x1x8x32xbf16>
    %4 = vector.shape_cast %3 : vector<1x1x8x32xbf16> to vector<8x32xbf16>
    %c0_4 = arith.constant 0 : index
    %c0_5 = arith.constant 0 : index
    %c0_6 = arith.constant 0 : index
    %c0_7 = arith.constant 0 : index
    %5 = vector.load %arg4[%c0_4, %c0_5, %c0_6, %c0_7] : memref<1x1x8x32xbf16, #tpu.memory_space<vmem>>, vector<1x1x8x32xbf16>
    %6 = vector.shape_cast %5 : vector<1x1x8x32xbf16> to vector<8x32xbf16>
    %c0_8 = arith.constant 0 : index
    %c0_9 = arith.constant 0 : index
    %c0_10 = arith.constant 0 : index
    %c0_11 = arith.constant 0 : index
    %7 = vector.load %arg5[%c0_8, %c0_9, %c0_10, %c0_11] : memref<1x1x8x32xbf16, #tpu.memory_space<vmem>>, vector<1x1x8x32xbf16>
    %8 = vector.shape_cast %7 : vector<1x1x8x32xbf16> to vector<8x32xbf16>
    %9 = vector.extract_strided_slice %4 {offsets = [0, 0], sizes = [8, 8], strides = [1, 1]} : vector<8x32xbf16> to vector<8x8xbf16>
    %10 = vector.extract_strided_slice %6 {offsets = [0, 0], sizes = [8, 8], strides = [1, 1]} : vector<8x32xbf16> to vector<8x8xbf16>
    %cst = arith.constant dense<0.000000e+00> : vector<8x8xf32>
    %11 = tpu.matmul %9, %10, %cst {dimension_numbers = #tpu.dot_dimension_numbers<[1], [1], [0], [0], [0, 0, 1, 0], [], []>} : vector<8x8xbf16>, vector<8x8xbf16>, vector<8x8xf32> -> vector<8x8xf32>
    %c0_12 = arith.constant 0 : index
    %c0_13 = arith.constant 0 : index
    %c0_14 = arith.constant 0 : index
    %12 = vector.load %arg7[%c0_12, %c0_13, %c0_14] : memref<4x8x1xf32, #tpu.memory_space<vmem>>, vector<1x8x1xf32>
    %13 = vector.shape_cast %12 : vector<1x8x1xf32> to vector<8x1xf32>
    %cst_15 = arith.constant dense<0xFF800000> : vector<8xf32>
    %14 = vector.multi_reduction <maximumf>, %11, %cst_15 [1] : vector<8x8xf32> to vector<8xf32>
    %15 = vector.shape_cast %14 : vector<8xf32> to vector<8x1xf32>
    %16 = arith.maximumf %13, %15 : vector<8x1xf32>
    %17 = arith.subf %13, %16 : vector<8x1xf32>
    %18 = math.exp %17 : vector<8x1xf32>
    %19 = vector.broadcast %16 : vector<8x1xf32> to vector<8x8xf32>
    %20 = arith.subf %11, %19 : vector<8x8xf32>
    %21 = math.exp %20 : vector<8x8xf32>
    %c0_16 = arith.constant 0 : index
    %c0_17 = arith.constant 0 : index
    %c0_18 = arith.constant 0 : index
    %22 = vector.load %arg8[%c0_16, %c0_17, %c0_18] : memref<4x8x1xf32, #tpu.memory_space<vmem>>, vector<1x8x1xf32>
    %23 = vector.shape_cast %22 : vector<1x8x1xf32> to vector<8x1xf32>
    %24 = arith.mulf %18, %23 : vector<8x1xf32>
    %cst_19 = arith.constant dense<0.000000e+00> : vector<8xf32>
    %25 = vector.multi_reduction <add>, %21, %cst_19 [1] : vector<8x8xf32> to vector<8xf32>
    %26 = vector.shape_cast %25 : vector<8xf32> to vector<8x1xf32>
    %27 = arith.addf %24, %26 : vector<8x1xf32>
    %c0_20 = arith.constant 0 : index
    %c0_21 = arith.constant 0 : index
    %c0_22 = arith.constant 0 : index
    %28 = vector.load %arg8[%c0_20, %c0_21, %c0_22] : memref<4x8x1xf32, #tpu.memory_space<vmem>>, vector<1x8x1xf32>
    %29 = vector.shape_cast %28 : vector<1x8x1xf32> to vector<8x1xf32>
    %30 = vector.shape_cast %27 : vector<8x1xf32> to vector<1x8x1xf32>
    tpu.vector_store %arg8[%c0_20, %c0_21, %c0_22], %30 {strides = array<i32>} : memref<4x8x1xf32, #tpu.memory_space<vmem>>, vector<1x8x1xf32>,
    %c0_23 = arith.constant 0 : index
    %c0_24 = arith.constant 0 : index
    %c0_25 = arith.constant 0 : index
    %31 = vector.load %arg9[%c0_23, %c0_24, %c0_25] : memref<4x8x8xf32, #tpu.memory_space<vmem>>, vector<1x8x8xf32>
    %32 = vector.shape_cast %31 : vector<1x8x8xf32> to vector<8x8xf32>
    %33 = vector.broadcast %18 : vector<8x1xf32> to vector<8x8xf32>
    %34 = arith.mulf %33, %32 : vector<8x8xf32>
    %35 = arith.truncf %21 : vector<8x8xf32> to vector<8x8xbf16>
    %36 = vector.extract_strided_slice %8 {offsets = [0, 0], sizes = [8, 8], strides = [1, 1]} : vector<8x32xbf16> to vector<8x8xbf16>
    %cst_26 = arith.constant dense<0.000000e+00> : vector<8x8xf32>
    %37 = tpu.matmul %35, %36, %cst_26 {dimension_numbers = #tpu.dot_dimension_numbers<[1], [0], [0], [1], [0, 0, 1, 1], [], []>} : vector<8x8xbf16>, vector<8x8xbf16>, vector<8x8xf32> -> vector<8x8xf32>
    %38 = arith.addf %34, %37 : vector<8x8xf32>
    %c0_27 = arith.constant 0 : index
    %c0_28 = arith.constant 0 : index
    %c0_29 = arith.constant 0 : index
    %39 = vector.load %arg9[%c0_27, %c0_28, %c0_29] : memref<4x8x8xf32, #tpu.memory_space<vmem>>, vector<1x8x8xf32>
    %40 = vector.shape_cast %39 : vector<1x8x8xf32> to vector<8x8xf32>
    %41 = vector.shape_cast %38 : vector<8x8xf32> to vector<1x8x8xf32>
    tpu.vector_store %arg9[%c0_27, %c0_28, %c0_29], %41 {strides = array<i32>} : memref<4x8x8xf32, #tpu.memory_space<vmem>>, vector<1x8x8xf32>,
    %c0_30 = arith.constant 0 : index
    %c0_31 = arith.constant 0 : index
    %c0_32 = arith.constant 0 : index
    %42 = vector.load %arg7[%c0_30, %c0_31, %c0_32] : memref<4x8x1xf32, #tpu.memory_space<vmem>>, vector<1x8x1xf32>
    %43 = vector.shape_cast %42 : vector<1x8x1xf32> to vector<8x1xf32>
    %44 = vector.shape_cast %16 : vector<8x1xf32> to vector<1x8x1xf32>
    tpu.vector_store %arg7[%c0_30, %c0_31, %c0_32], %44 {strides = array<i32>} : memref<4x8x1xf32, #tpu.memory_space<vmem>>, vector<1x8x1xf32>,
    %45 = vector.extract_strided_slice %4 {offsets = [0, 8], sizes = [8, 8], strides = [1, 1]} : vector<8x32xbf16> to vector<8x8xbf16>
    %46 = vector.extract_strided_slice %6 {offsets = [0, 8], sizes = [8, 8], strides = [1, 1]} : vector<8x32xbf16> to vector<8x8xbf16>
    %cst_33 = arith.constant dense<0.000000e+00> : vector<8x8xf32>
    %47 = tpu.matmul %45, %46, %cst_33 {dimension_numbers = #tpu.dot_dimension_numbers<[1], [1], [0], [0], [0, 0, 1, 0], [], []>} : vector<8x8xbf16>, vector<8x8xbf16>, vector<8x8xf32> -> vector<8x8xf32>
    %c1 = arith.constant 1 : index
    %c0_34 = arith.constant 0 : index
    %c0_35 = arith.constant 0 : index
    %48 = vector.load %arg7[%c1, %c0_34, %c0_35] : memref<4x8x1xf32, #tpu.memory_space<vmem>>, vector<1x8x1xf32>
    %49 = vector.shape_cast %48 : vector<1x8x1xf32> to vector<8x1xf32>
    %cst_36 = arith.constant dense<0xFF800000> : vector<8xf32>
    %50 = vector.multi_reduction <maximumf>, %47, %cst_36 [1] : vector<8x8xf32> to vector<8xf32>
    %51 = vector.shape_cast %50 : vector<8xf32> to vector<8x1xf32>
    %52 = arith.maximumf %49, %51 : vector<8x1xf32>
    %53 = arith.subf %49, %52 : vector<8x1xf32>
    %54 = math.exp %53 : vector<8x1xf32>
    %55 = vector.broadcast %52 : vector<8x1xf32> to vector<8x8xf32>
    %56 = arith.subf %47, %55 : vector<8x8xf32>
    %57 = math.exp %56 : vector<8x8xf32>
    %c1_37 = arith.constant 1 : index
    %c0_38 = arith.constant 0 : index
    %c0_39 = arith.constant 0 : index
    %58 = vector.load %arg8[%c1_37, %c0_38, %c0_39] : memref<4x8x1xf32, #tpu.memory_space<vmem>>, vector<1x8x1xf32>
    %59 = vector.shape_cast %58 : vector<1x8x1xf32> to vector<8x1xf32>
    %60 = arith.mulf %54, %59 : vector<8x1xf32>
    %cst_40 = arith.constant dense<0.000000e+00> : vector<8xf32>
    %61 = vector.multi_reduction <add>, %57, %cst_40 [1] : vector<8x8xf32> to vector<8xf32>
    %62 = vector.shape_cast %61 : vector<8xf32> to vector<8x1xf32>
    %63 = arith.addf %60, %62 : vector<8x1xf32>
    %c1_41 = arith.constant 1 : index
    %c0_42 = arith.constant 0 : index
    %c0_43 = arith.constant 0 : index
    %64 = vector.load %arg8[%c1_41, %c0_42, %c0_43] : memref<4x8x1xf32, #tpu.memory_space<vmem>>, vector<1x8x1xf32>
    %65 = vector.shape_cast %64 : vector<1x8x1xf32> to vector<8x1xf32>
    %66 = vector.shape_cast %63 : vector<8x1xf32> to vector<1x8x1xf32>
    tpu.vector_store %arg8[%c1_41, %c0_42, %c0_43], %66 {strides = array<i32>} : memref<4x8x1xf32, #tpu.memory_space<vmem>>, vector<1x8x1xf32>,
    %c1_44 = arith.constant 1 : index
    %c0_45 = arith.constant 0 : index
    %c0_46 = arith.constant 0 : index
    %67 = vector.load %arg9[%c1_44, %c0_45, %c0_46] : memref<4x8x8xf32, #tpu.memory_space<vmem>>, vector<1x8x8xf32>
    %68 = vector.shape_cast %67 : vector<1x8x8xf32> to vector<8x8xf32>
    %69 = vector.broadcast %54 : vector<8x1xf32> to vector<8x8xf32>
    %70 = arith.mulf %69, %68 : vector<8x8xf32>
    %71 = arith.truncf %57 : vector<8x8xf32> to vector<8x8xbf16>
    %72 = vector.extract_strided_slice %8 {offsets = [0, 8], sizes = [8, 8], strides = [1, 1]} : vector<8x32xbf16> to vector<8x8xbf16>
    %cst_47 = arith.constant dense<0.000000e+00> : vector<8x8xf32>
    %73 = tpu.matmul %71, %72, %cst_47 {dimension_numbers = #tpu.dot_dimension_numbers<[1], [0], [0], [1], [0, 0, 1, 1], [], []>} : vector<8x8xbf16>, vector<8x8xbf16>, vector<8x8xf32> -> vector<8x8xf32>
    %74 = arith.addf %70, %73 : vector<8x8xf32>
    %c1_48 = arith.constant 1 : index
    %c0_49 = arith.constant 0 : index
    %c0_50 = arith.constant 0 : index
    %75 = vector.load %arg9[%c1_48, %c0_49, %c0_50] : memref<4x8x8xf32, #tpu.memory_space<vmem>>, vector<1x8x8xf32>
    %76 = vector.shape_cast %75 : vector<1x8x8xf32> to vector<8x8xf32>
    %77 = vector.shape_cast %74 : vector<8x8xf32> to vector<1x8x8xf32>
    tpu.vector_store %arg9[%c1_48, %c0_49, %c0_50], %77 {strides = array<i32>} : memref<4x8x8xf32, #tpu.memory_space<vmem>>, vector<1x8x8xf32>,
    %c1_51 = arith.constant 1 : index
    %c0_52 = arith.constant 0 : index
    %c0_53 = arith.constant 0 : index
    %78 = vector.load %arg7[%c1_51, %c0_52, %c0_53] : memref<4x8x1xf32, #tpu.memory_space<vmem>>, vector<1x8x1xf32>
    %79 = vector.shape_cast %78 : vector<1x8x1xf32> to vector<8x1xf32>
    %80 = vector.shape_cast %52 : vector<8x1xf32> to vector<1x8x1xf32>
    tpu.vector_store %arg7[%c1_51, %c0_52, %c0_53], %80 {strides = array<i32>} : memref<4x8x1xf32, #tpu.memory_space<vmem>>, vector<1x8x1xf32>,
    %81 = vector.extract_strided_slice %4 {offsets = [0, 16], sizes = [8, 8], strides = [1, 1]} : vector<8x32xbf16> to vector<8x8xbf16>
    %82 = vector.extract_strided_slice %6 {offsets = [0, 16], sizes = [8, 8], strides = [1, 1]} : vector<8x32xbf16> to vector<8x8xbf16>
    %cst_54 = arith.constant dense<0.000000e+00> : vector<8x8xf32>
    %83 = tpu.matmul %81, %82, %cst_54 {dimension_numbers = #tpu.dot_dimension_numbers<[1], [1], [0], [0], [0, 0, 1, 0], [], []>} : vector<8x8xbf16>, vector<8x8xbf16>, vector<8x8xf32> -> vector<8x8xf32>
    %c2 = arith.constant 2 : index
    %c0_55 = arith.constant 0 : index
    %c0_56 = arith.constant 0 : index
    %84 = vector.load %arg7[%c2, %c0_55, %c0_56] : memref<4x8x1xf32, #tpu.memory_space<vmem>>, vector<1x8x1xf32>
    %85 = vector.shape_cast %84 : vector<1x8x1xf32> to vector<8x1xf32>
    %cst_57 = arith.constant dense<0xFF800000> : vector<8xf32>
    %86 = vector.multi_reduction <maximumf>, %83, %cst_57 [1] : vector<8x8xf32> to vector<8xf32>
    %87 = vector.shape_cast %86 : vector<8xf32> to vector<8x1xf32>
    %88 = arith.maximumf %85, %87 : vector<8x1xf32>
    %89 = arith.subf %85, %88 : vector<8x1xf32>
    %90 = math.exp %89 : vector<8x1xf32>
    %91 = vector.broadcast %88 : vector<8x1xf32> to vector<8x8xf32>
    %92 = arith.subf %83, %91 : vector<8x8xf32>
    %93 = math.exp %92 : vector<8x8xf32>
    %c2_58 = arith.constant 2 : index
    %c0_59 = arith.constant 0 : index
    %c0_60 = arith.constant 0 : index
    %94 = vector.load %arg8[%c2_58, %c0_59, %c0_60] : memref<4x8x1xf32, #tpu.memory_space<vmem>>, vector<1x8x1xf32>
    %95 = vector.shape_cast %94 : vector<1x8x1xf32> to vector<8x1xf32>
    %96 = arith.mulf %90, %95 : vector<8x1xf32>
    %cst_61 = arith.constant dense<0.000000e+00> : vector<8xf32>
    %97 = vector.multi_reduction <add>, %93, %cst_61 [1] : vector<8x8xf32> to vector<8xf32>
    %98 = vector.shape_cast %97 : vector<8xf32> to vector<8x1xf32>
    %99 = arith.addf %96, %98 : vector<8x1xf32>
    %c2_62 = arith.constant 2 : index
    %c0_63 = arith.constant 0 : index
    %c0_64 = arith.constant 0 : index
    %100 = vector.load %arg8[%c2_62, %c0_63, %c0_64] : memref<4x8x1xf32, #tpu.memory_space<vmem>>, vector<1x8x1xf32>
    %101 = vector.shape_cast %100 : vector<1x8x1xf32> to vector<8x1xf32>
    %102 = vector.shape_cast %99 : vector<8x1xf32> to vector<1x8x1xf32>
    tpu.vector_store %arg8[%c2_62, %c0_63, %c0_64], %102 {strides = array<i32>} : memref<4x8x1xf32, #tpu.memory_space<vmem>>, vector<1x8x1xf32>,
    %c2_65 = arith.constant 2 : index
    %c0_66 = arith.constant 0 : index
    %c0_67 = arith.constant 0 : index
    %103 = vector.load %arg9[%c2_65, %c0_66, %c0_67] : memref<4x8x8xf32, #tpu.memory_space<vmem>>, vector<1x8x8xf32>
    %104 = vector.shape_cast %103 : vector<1x8x8xf32> to vector<8x8xf32>
    %105 = vector.broadcast %90 : vector<8x1xf32> to vector<8x8xf32>
    %106 = arith.mulf %105, %104 : vector<8x8xf32>
    %107 = arith.truncf %93 : vector<8x8xf32> to vector<8x8xbf16>
    %108 = vector.extract_strided_slice %8 {offsets = [0, 16], sizes = [8, 8], strides = [1, 1]} : vector<8x32xbf16> to vector<8x8xbf16>
    %cst_68 = arith.constant dense<0.000000e+00> : vector<8x8xf32>
    %109 = tpu.matmul %107, %108, %cst_68 {dimension_numbers = #tpu.dot_dimension_numbers<[1], [0], [0], [1], [0, 0, 1, 1], [], []>} : vector<8x8xbf16>, vector<8x8xbf16>, vector<8x8xf32> -> vector<8x8xf32>
    %110 = arith.addf %106, %109 : vector<8x8xf32>
    %c2_69 = arith.constant 2 : index
    %c0_70 = arith.constant 0 : index
    %c0_71 = arith.constant 0 : index
    %111 = vector.load %arg9[%c2_69, %c0_70, %c0_71] : memref<4x8x8xf32, #tpu.memory_space<vmem>>, vector<1x8x8xf32>
    %112 = vector.shape_cast %111 : vector<1x8x8xf32> to vector<8x8xf32>
    %113 = vector.shape_cast %110 : vector<8x8xf32> to vector<1x8x8xf32>
    tpu.vector_store %arg9[%c2_69, %c0_70, %c0_71], %113 {strides = array<i32>} : memref<4x8x8xf32, #tpu.memory_space<vmem>>, vector<1x8x8xf32>,
    %c2_72 = arith.constant 2 : index
    %c0_73 = arith.constant 0 : index
    %c0_74 = arith.constant 0 : index
    %114 = vector.load %arg7[%c2_72, %c0_73, %c0_74] : memref<4x8x1xf32, #tpu.memory_space<vmem>>, vector<1x8x1xf32>
    %115 = vector.shape_cast %114 : vector<1x8x1xf32> to vector<8x1xf32>
    %116 = vector.shape_cast %88 : vector<8x1xf32> to vector<1x8x1xf32>
    tpu.vector_store %arg7[%c2_72, %c0_73, %c0_74], %116 {strides = array<i32>} : memref<4x8x1xf32, #tpu.memory_space<vmem>>, vector<1x8x1xf32>,
    %117 = vector.extract_strided_slice %4 {offsets = [0, 24], sizes = [8, 8], strides = [1, 1]} : vector<8x32xbf16> to vector<8x8xbf16>
    %118 = vector.extract_strided_slice %6 {offsets = [0, 24], sizes = [8, 8], strides = [1, 1]} : vector<8x32xbf16> to vector<8x8xbf16>
    %cst_75 = arith.constant dense<0.000000e+00> : vector<8x8xf32>
    %119 = tpu.matmul %117, %118, %cst_75 {dimension_numbers = #tpu.dot_dimension_numbers<[1], [1], [0], [0], [0, 0, 1, 0], [], []>} : vector<8x8xbf16>, vector<8x8xbf16>, vector<8x8xf32> -> vector<8x8xf32>
    %c3 = arith.constant 3 : index
    %c0_76 = arith.constant 0 : index
    %c0_77 = arith.constant 0 : index
    %120 = vector.load %arg7[%c3, %c0_76, %c0_77] : memref<4x8x1xf32, #tpu.memory_space<vmem>>, vector<1x8x1xf32>
    %121 = vector.shape_cast %120 : vector<1x8x1xf32> to vector<8x1xf32>
    %cst_78 = arith.constant dense<0xFF800000> : vector<8xf32>
    %122 = vector.multi_reduction <maximumf>, %119, %cst_78 [1] : vector<8x8xf32> to vector<8xf32>
    %123 = vector.shape_cast %122 : vector<8xf32> to vector<8x1xf32>
    %124 = arith.maximumf %121, %123 : vector<8x1xf32>
    %125 = arith.subf %121, %124 : vector<8x1xf32>
    %126 = math.exp %125 : vector<8x1xf32>
    %127 = vector.broadcast %124 : vector<8x1xf32> to vector<8x8xf32>
    %128 = arith.subf %119, %127 : vector<8x8xf32>
    %129 = math.exp %128 : vector<8x8xf32>
    %c3_79 = arith.constant 3 : index
    %c0_80 = arith.constant 0 : index
    %c0_81 = arith.constant 0 : index
    %130 = vector.load %arg8[%c3_79, %c0_80, %c0_81] : memref<4x8x1xf32, #tpu.memory_space<vmem>>, vector<1x8x1xf32>
    %131 = vector.shape_cast %130 : vector<1x8x1xf32> to vector<8x1xf32>
    %132 = arith.mulf %126, %131 : vector<8x1xf32>
    %cst_82 = arith.constant dense<0.000000e+00> : vector<8xf32>
    %133 = vector.multi_reduction <add>, %129, %cst_82 [1] : vector<8x8xf32> to vector<8xf32>
    %134 = vector.shape_cast %133 : vector<8xf32> to vector<8x1xf32>
    %135 = arith.addf %132, %134 : vector<8x1xf32>
    %c3_83 = arith.constant 3 : index
    %c0_84 = arith.constant 0 : index
    %c0_85 = arith.constant 0 : index
    %136 = vector.load %arg8[%c3_83, %c0_84, %c0_85] : memref<4x8x1xf32, #tpu.memory_space<vmem>>, vector<1x8x1xf32>
    %137 = vector.shape_cast %136 : vector<1x8x1xf32> to vector<8x1xf32>
    %138 = vector.shape_cast %135 : vector<8x1xf32> to vector<1x8x1xf32>
    tpu.vector_store %arg8[%c3_83, %c0_84, %c0_85], %138 {strides = array<i32>} : memref<4x8x1xf32, #tpu.memory_space<vmem>>, vector<1x8x1xf32>,
    %c3_86 = arith.constant 3 : index
    %c0_87 = arith.constant 0 : index
    %c0_88 = arith.constant 0 : index
    %139 = vector.load %arg9[%c3_86, %c0_87, %c0_88] : memref<4x8x8xf32, #tpu.memory_space<vmem>>, vector<1x8x8xf32>
    %140 = vector.shape_cast %139 : vector<1x8x8xf32> to vector<8x8xf32>
    %141 = vector.broadcast %126 : vector<8x1xf32> to vector<8x8xf32>
    %142 = arith.mulf %141, %140 : vector<8x8xf32>
    %143 = arith.truncf %129 : vector<8x8xf32> to vector<8x8xbf16>
    %144 = vector.extract_strided_slice %8 {offsets = [0, 24], sizes = [8, 8], strides = [1, 1]} : vector<8x32xbf16> to vector<8x8xbf16>
    %cst_89 = arith.constant dense<0.000000e+00> : vector<8x8xf32>
    %145 = tpu.matmul %143, %144, %cst_89 {dimension_numbers = #tpu.dot_dimension_numbers<[1], [0], [0], [1], [0, 0, 1, 1], [], []>} : vector<8x8xbf16>, vector<8x8xbf16>, vector<8x8xf32> -> vector<8x8xf32>
    %146 = arith.addf %142, %145 : vector<8x8xf32>
    %c3_90 = arith.constant 3 : index
    %c0_91 = arith.constant 0 : index
    %c0_92 = arith.constant 0 : index
    %147 = vector.load %arg9[%c3_90, %c0_91, %c0_92] : memref<4x8x8xf32, #tpu.memory_space<vmem>>, vector<1x8x8xf32>
    %148 = vector.shape_cast %147 : vector<1x8x8xf32> to vector<8x8xf32>
    %149 = vector.shape_cast %146 : vector<8x8xf32> to vector<1x8x8xf32>
    tpu.vector_store %arg9[%c3_90, %c0_91, %c0_92], %149 {strides = array<i32>} : memref<4x8x8xf32, #tpu.memory_space<vmem>>, vector<1x8x8xf32>,
    %c3_93 = arith.constant 3 : index
    %c0_94 = arith.constant 0 : index
    %c0_95 = arith.constant 0 : index
    %150 = vector.load %arg7[%c3_93, %c0_94, %c0_95] : memref<4x8x1xf32, #tpu.memory_space<vmem>>, vector<1x8x1xf32>
    %151 = vector.shape_cast %150 : vector<1x8x1xf32> to vector<8x1xf32>
    %152 = vector.shape_cast %124 : vector<8x1xf32> to vector<1x8x1xf32>
    tpu.vector_store %arg7[%c3_93, %c0_94, %c0_95], %152 {strides = array<i32>} : memref<4x8x1xf32, #tpu.memory_space<vmem>>, vector<1x8x1xf32>,
    %c0_i32_96 = arith.constant 0 : i32
    %153 = arith.cmpi eq, %arg2, %c0_i32_96 : i32
    %154 = arith.extui %153 : i1 to i32
    %c0_i32_97 = arith.constant 0 : i32
    %155 = arith.cmpi ne, %154, %c0_i32_97 : i32
    scf.if %155 {
      %c0_98 = arith.constant 0 : index
      %c0_99 = arith.constant 0 : index
      %c0_100 = arith.constant 0 : index
      %156 = vector.load %arg8[%c0_98, %c0_99, %c0_100] : memref<4x8x1xf32, #tpu.memory_space<vmem>>, vector<1x8x1xf32>
      %157 = vector.shape_cast %156 : vector<1x8x1xf32> to vector<8x1xf32>
      %158 = tpu.reciprocal %157 {approx = true} : vector<8x1xf32> -> vector<8x1xf32>
      %c0_101 = arith.constant 0 : index
      %c0_102 = arith.constant 0 : index
      %c0_103 = arith.constant 0 : index
      %159 = vector.load %arg9[%c0_101, %c0_102, %c0_103] : memref<4x8x8xf32, #tpu.memory_space<vmem>>, vector<1x8x8xf32>
      %160 = vector.shape_cast %159 : vector<1x8x8xf32> to vector<8x8xf32>
      %161 = vector.broadcast %158 : vector<8x1xf32> to vector<8x8xf32>
      %162 = arith.mulf %160, %161 : vector<8x8xf32>
      %163 = arith.truncf %162 : vector<8x8xf32> to vector<8x8xbf16>
      %c0_104 = arith.constant 0 : index
      %c0_105 = arith.constant 0 : index
      %c0_106 = arith.constant 0 : index
      %164 = vector.load %arg6[%c0_104, %c0_105, %c0_106] : memref<1x8x32xbf16, #tpu.memory_space<vmem>>, vector<1x8x8xbf16>
      %165 = vector.shape_cast %164 : vector<1x8x8xbf16> to vector<8x8xbf16>
      %166 = vector.shape_cast %163 : vector<8x8xbf16> to vector<1x8x8xbf16>
      tpu.vector_store %arg6[%c0_104, %c0_105, %c0_106], %166 {strides = array<i32>} : memref<1x8x32xbf16, #tpu.memory_space<vmem>>, vector<1x8x8xbf16>,
      %c1_107 = arith.constant 1 : index
      %c0_108 = arith.constant 0 : index
      %c0_109 = arith.constant 0 : index
      %167 = vector.load %arg8[%c1_107, %c0_108, %c0_109] : memref<4x8x1xf32, #tpu.memory_space<vmem>>, vector<1x8x1xf32>
      %168 = vector.shape_cast %167 : vector<1x8x1xf32> to vector<8x1xf32>
      %169 = tpu.reciprocal %168 {approx = true} : vector<8x1xf32> -> vector<8x1xf32>
      %c1_110 = arith.constant 1 : index
      %c0_111 = arith.constant 0 : index
      %c0_112 = arith.constant 0 : index
      %170 = vector.load %arg9[%c1_110, %c0_111, %c0_112] : memref<4x8x8xf32, #tpu.memory_space<vmem>>, vector<1x8x8xf32>
      %171 = vector.shape_cast %170 : vector<1x8x8xf32> to vector<8x8xf32>
      %172 = vector.broadcast %169 : vector<8x1xf32> to vector<8x8xf32>
      %173 = arith.mulf %171, %172 : vector<8x8xf32>
      %174 = arith.truncf %173 : vector<8x8xf32> to vector<8x8xbf16>
      %c0_113 = arith.constant 0 : index
      %c0_114 = arith.constant 0 : index
      %c8 = arith.constant 8 : index
      %175 = vector.load %arg6[%c0_113, %c0_114, %c8] : memref<1x8x32xbf16, #tpu.memory_space<vmem>>, vector<1x8x8xbf16>
      %176 = vector.shape_cast %175 : vector<1x8x8xbf16> to vector<8x8xbf16>
      %177 = vector.shape_cast %174 : vector<8x8xbf16> to vector<1x8x8xbf16>
      tpu.vector_store %arg6[%c0_113, %c0_114, %c8], %177 {strides = array<i32>} : memref<1x8x32xbf16, #tpu.memory_space<vmem>>, vector<1x8x8xbf16>,
      %c2_115 = arith.constant 2 : index
      %c0_116 = arith.constant 0 : index
      %c0_117 = arith.constant 0 : index
      %178 = vector.load %arg8[%c2_115, %c0_116, %c0_117] : memref<4x8x1xf32, #tpu.memory_space<vmem>>, vector<1x8x1xf32>
      %179 = vector.shape_cast %178 : vector<1x8x1xf32> to vector<8x1xf32>
      %180 = tpu.reciprocal %179 {approx = true} : vector<8x1xf32> -> vector<8x1xf32>
      %c2_118 = arith.constant 2 : index
      %c0_119 = arith.constant 0 : index
      %c0_120 = arith.constant 0 : index
      %181 = vector.load %arg9[%c2_118, %c0_119, %c0_120] : memref<4x8x8xf32, #tpu.memory_space<vmem>>, vector<1x8x8xf32>
      %182 = vector.shape_cast %181 : vector<1x8x8xf32> to vector<8x8xf32>
      %183 = vector.broadcast %180 : vector<8x1xf32> to vector<8x8xf32>
      %184 = arith.mulf %182, %183 : vector<8x8xf32>
      %185 = arith.truncf %184 : vector<8x8xf32> to vector<8x8xbf16>
      %c0_121 = arith.constant 0 : index
      %c0_122 = arith.constant 0 : index
      %c16 = arith.constant 16 : index
      %186 = vector.load %arg6[%c0_121, %c0_122, %c16] : memref<1x8x32xbf16, #tpu.memory_space<vmem>>, vector<1x8x8xbf16>
      %187 = vector.shape_cast %186 : vector<1x8x8xbf16> to vector<8x8xbf16>
      %188 = vector.shape_cast %185 : vector<8x8xbf16> to vector<1x8x8xbf16>
      tpu.vector_store %arg6[%c0_121, %c0_122, %c16], %188 {strides = array<i32>} : memref<1x8x32xbf16, #tpu.memory_space<vmem>>, vector<1x8x8xbf16>,
      %c3_123 = arith.constant 3 : index
      %c0_124 = arith.constant 0 : index
      %c0_125 = arith.constant 0 : index
      %189 = vector.load %arg8[%c3_123, %c0_124, %c0_125] : memref<4x8x1xf32, #tpu.memory_space<vmem>>, vector<1x8x1xf32>
      %190 = vector.shape_cast %189 : vector<1x8x1xf32> to vector<8x1xf32>
      %191 = tpu.reciprocal %190 {approx = true} : vector<8x1xf32> -> vector<8x1xf32>
      %c3_126 = arith.constant 3 : index
      %c0_127 = arith.constant 0 : index
      %c0_128 = arith.constant 0 : index
      %192 = vector.load %arg9[%c3_126, %c0_127, %c0_128] : memref<4x8x8xf32, #tpu.memory_space<vmem>>, vector<1x8x8xf32>
      %193 = vector.shape_cast %192 : vector<1x8x8xf32> to vector<8x8xf32>
      %194 = vector.broadcast %191 : vector<8x1xf32> to vector<8x8xf32>
      %195 = arith.mulf %193, %194 : vector<8x8xf32>
      %196 = arith.truncf %195 : vector<8x8xf32> to vector<8x8xbf16>
      %c0_129 = arith.constant 0 : index
      %c0_130 = arith.constant 0 : index
      %c24 = arith.constant 24 : index
      %197 = vector.load %arg6[%c0_129, %c0_130, %c24] : memref<1x8x32xbf16, #tpu.memory_space<vmem>>, vector<1x8x8xbf16>
      %198 = vector.shape_cast %197 : vector<1x8x8xbf16> to vector<8x8xbf16>
      %199 = vector.shape_cast %196 : vector<8x8xbf16> to vector<1x8x8xbf16>
      tpu.vector_store %arg6[%c0_129, %c0_130, %c24], %199 {strides = array<i32>} : memref<1x8x32xbf16, #tpu.memory_space<vmem>>, vector<1x8x8xbf16>,
    } else {
    }
    return
  }
  func.func @transform_0(%arg0: i32, %arg1: i32, %arg2: i32) -> (i32, i32, i32, i32) {
    %c0_i32 = arith.constant 0 : i32
    %c0_i32_0 = arith.constant 0 : i32
    %c0_i32_1 = arith.constant 0 : i32
    return %c0_i32, %arg0, %arg1, %c0_i32_0 : i32, i32, i32, i32
  }
  func.func @transform_1(%arg0: i32, %arg1: i32, %arg2: i32) -> (i32, i32, i32, i32) {
    %c1_i32 = arith.constant 1 : i32
    %c0_i32 = arith.constant 0 : i32
    %c0_i32_0 = arith.constant 0 : i32
    return %c1_i32, %arg0, %arg2, %c0_i32 : i32, i32, i32, i32
  }
  func.func @transform_2(%arg0: i32, %arg1: i32, %arg2: i32) -> (i32, i32, i32, i32) {
    %c2_i32 = arith.constant 2 : i32
    %c0_i32 = arith.constant 0 : i32
    %c0_i32_0 = arith.constant 0 : i32
    return %c2_i32, %arg0, %arg2, %c0_i32 : i32, i32, i32, i32
  }
  func.func @transform_3(%arg0: i32, %arg1: i32, %arg2: i32) -> (i32, i32, i32) {
    %c0_i32 = arith.constant 0 : i32
    %c0_i32_0 = arith.constant 0 : i32
    return %arg0, %arg1, %c0_i32 : i32, i32, i32
  }
}

</mosaic_0001>

<bundles_post_ra>
// kernel: multi_head_attention.5
= control target key start
LH: loop header
LB: loop body
LE: loop exit
PB: predicated region body
PF: predicated region fallthrough
CT: control target
= control target key end

     0   :  { %8 = vsyncpa [#allocation3], 0  ;;  %s283_s0 = inlined_call_operand.vmem [shape: bf16[2,8,32], index: 0, kind: input, shape index: {}]   ;;  %s284_s1 = inlined_call_operand.hbm [shape: bf16[32,32], index: 1, kind: input, shape index: {}]   ;;  %s285_s2 = inlined_call_operand.vmem [shape: f32[1,32], index: 2, kind: input, shape index: {}]   ;;  %s286_s3 = inlined_call_operand.hbm [shape: f32[8,2,32], index: 3, kind: output, shape index: {}]  }
   0x1   :  { %9 = vsyncpa [#allocation4], 0  ;;  %s16_s14 = sshll.u32 %s284_s1, 4  ;;  %s226_s15 = smov [#allocation2]   ;;  %s17_s14 = int_to_ptr.hbm [resolvable:$true] %s16_s14 }
   0x2   :  { %s18_s16 = sshll.u32 %s226_s15, 4  ;;  %s227_s17 = smov 64   ;;  %s19_s16 = int_to_ptr.vmem [resolvable:$true] %s18_s16 }
   0x3   :  { %s228_s18 = smov 4  }
   0x4   :  { %24 = dma.hbm_to_vmem [thread:$0]  %s17_s14, 256, %s19_s16, [#allocation3], %s227_s17, %s227_s17, %s228_s18  }
   0x5   :  { %222 = dma.done.wait [#allocation3], 256  }
   0x6   :  { %223 = vsyncadd [#allocation3], 4294967040  ;;  %v166_v0 = vld [vmem:[#allocation2 + $0x8] sm:$0xff]  ;;  %v165_v1 = vld [vmem:[#allocation2] sm:$0xff]  ;;  %vm53_vm0 = vcmask 261120   ;;  %vm85_vm1 = vcmask 253952  }
   0x7   :  { %63 = vmatpush.bf16.msra.mxu0 %v166_v0  ;;  %105 = vmatpush.bf16.msra.mxu1 %v166_v0  ;;  %v37_v2 = vld [vmem:[%s283_s0] sm:$0xf]  ;;  %v163_v3 = vld [vmem:[%s283_s0 + $0x4] sm:$0xf]  ;;  %s229_s0 = smov [#allocation5]   ;;  %s141_s26 = sshll.u32 %s286_s3, 4  ;;  %s142_s26 = int_to_ptr.hbm [resolvable:$true] %s141_s26 }
   0x8   :  { %v173_v4 = vld [vmem:[%s285_s2] ss:$0 sm:$0xff]  ;;  %s139_s2 = sshll.u32 %s229_s0, 4  ;;  %s230_s27 = smov 32   ;;  %s140_s2 = int_to_ptr.vmem [resolvable:$true] %s139_s2 }
   0x9   :  { %s231_s28 = smov 2  }
   0xb   :  { %64 = vmatpush.bf16.msra.mxu0 %v165_v1  ;;  %106 = vmatpush.bf16.msra.mxu1 %v165_v1 }
   0xe   :  { %162 = vmatmul.msk.bf16.vlgmr.msra.gmra.mxu0 %vm53_vm0, %v37_v2  ;;  %164 = vmatmul.msk.bf16.vlgmr.msra.gmra.mxu1 %vm53_vm0, %v163_v3 }
  0x8b   :  { %v66_v5 = vpop.f32.mrf.mxu0  ;;  %v108_v6 = vpop.f32.mrf.mxu1 }
  0x8c   :  { %v67_v7 = vadd.f32 %v173_v4, %v66_v5  ;;  %v109_v8 = vadd.f32 %v173_v4, %v108_v6 }
  0x8e   :  { %v71_v9 = vrot.slane %v67_v7, 1  ;;  %v72_v10 = vrot.slane %v67_v7, 2  ;;  %v73_v11 = vrot.slane %v67_v7, 3  ;;  %86 = vst.msk [vmem:[#allocation5] sm:$0x1] %vm85_vm1, %v67_v7  ;;  %v74_v12 = vrot.slane %v67_v7, 4 }
  0x8f   :  { %127 = vst.msk [vmem:[#allocation5 + $0x1] sm:$0x1] %vm85_vm1, %v109_v8  ;;  %v75_v13 = vrot.slane %v67_v7, 5  ;;  %v76_v14 = vrot.slane %v67_v7, 6  ;;  %v77_v15 = vrot.slane %v67_v7, 7  ;;  %v113_v16 = vrot.slane %v109_v8, 1 }
  0x90   :  { %87 = vst.msk [vmem:[#allocation5 + $0x2] sm:$0x1] %vm85_vm1, %v71_v9  ;;  %v114_v19 = vrot.slane %v109_v8, 2  ;;  %v115_v20 = vrot.slane %v109_v8, 3  ;;  %v116_v21 = vrot.slane %v109_v8, 4  ;;  %v117_v22 = vrot.slane %v109_v8, 5 }
  0x91   :  { %88 = vst.msk [vmem:[#allocation5 + $0x4] sm:$0x1] %vm85_vm1, %v72_v10  ;;  %v118_v23 = vrot.slane %v109_v8, 6  ;;  %v119_v24 = vrot.slane %v109_v8, 7 }
  0x92   :  { %89 = vst.msk [vmem:[#allocation5 + $0x6] sm:$0x1] %vm85_vm1, %v73_v11 }
  0x93   :  { %90 = vst.msk [vmem:[#allocation5 + $0x8] sm:$0x1] %vm85_vm1, %v74_v12  ;;  %v68_v17 = vpop.f32.mrf.mxu0  ;;  %v110_v18 = vpop.f32.mrf.mxu1 }
  0x94   :  { %91 = vst.msk [vmem:[#allocation5 + $0xa] sm:$0x1] %vm85_vm1, %v75_v13 }
  0x95   :  { %92 = vst.msk [vmem:[#allocation5 + $0xc] sm:$0x1] %vm85_vm1, %v76_v14 }
  0x96   :  { %93 = vst.msk [vmem:[#allocation5 + $0xe] sm:$0x1] %vm85_vm1, %v77_v15 }
  0x97   :  { %128 = vst.msk [vmem:[#allocation5 + $0x3] sm:$0x1] %vm85_vm1, %v113_v16 }
  0x98   :  { %129 = vst.msk [vmem:[#allocation5 + $0x5] sm:$0x1] %vm85_vm1, %v114_v19 }
  0x99   :  { %130 = vst.msk [vmem:[#allocation5 + $0x7] sm:$0x1] %vm85_vm1, %v115_v20 }
  0x9a   :  { %131 = vst.msk [vmem:[#allocation5 + $0x9] sm:$0x1] %vm85_vm1, %v116_v21 }
  0x9b   :  { %132 = vst.msk [vmem:[#allocation5 + $0xb] sm:$0x1] %vm85_vm1, %v117_v22 }
  0x9c   :  { %133 = vst.msk [vmem:[#allocation5 + $0xd] sm:$0x1] %vm85_vm1, %v118_v23 }
  0x9d   :  { %134 = vst.msk [vmem:[#allocation5 + $0xf] sm:$0x1] %vm85_vm1, %v119_v24 }
  0x9e   :  { %147 = dma.vmem_to_hbm [thread:$0]  %s140_s2, 256, %s142_s26, [#allocation4], %s230_s27, %s230_s27, %s231_s28  }
  0x9f   :  { %224 = dma.done.wait [#allocation4], 256  }
  0xa0   :  { %225 = vsyncadd [#allocation4], 4294967040 }
  0xa1   :  { %152 = vsyncpa [#allocation3], 1 }
  0xa2   :  { %153 = vsyncpa [#allocation4], 1 }

// kernel: multi_head_attention.3
= control target key start
LH: loop header
LB: loop body
LE: loop exit
PB: predicated region body
PF: predicated region fallthrough
CT: control target
= control target key end

     0   :  { %10 = vsyncpa [#allocation3], 0  ;;  %s846_s0 = inlined_call_operand.hbm [shape: f32[8,2,32], index: 0, kind: input, shape index: {}]   ;;  %s847_s1 = inlined_call_operand.hbm [shape: f32[8,2,32], index: 1, kind: input, shape index: {}]   ;;  %s848_s2 = inlined_call_operand.hbm [shape: f32[8,2,32], index: 2, kind: input, shape index: {}]   ;;  %s849_s3 = inlined_call_operand.hbm [shape: bf16[3,32,32], index: 3, kind: input, shape index: {}]   ;;  %s850_s4 = inlined_call_operand.vmem [shape: f32[3,1,32], index: 4, kind: input, shape index: {}]   ;;  %s851_s5 = inlined_call_operand.vmem [shape: bf16[3,2,8,32], index: 5, kind: output, shape index: {}]  }
   0x1   :  { %11 = vsyncpa [#allocation5], 0 }
   0x2   :  { %12 = vsyncpa [#allocation8], 0  ;;  %s30_s20 = sshll.u32 %s847_s1, 4  ;;  %s715_s21 = smov [#allocation4]   ;;  %s31_s20 = int_to_ptr.hbm [resolvable:$true] %s30_s20 }
   0x3   :  { %s32_s22 = sshll.u32 %s715_s21, 4  ;;  %s17_s25 = sshll.u32 %s846_s0, 4  ;;  %s33_s22 = int_to_ptr.vmem [resolvable:$true] %s32_s22  ;;  %s18_s25 = int_to_ptr.hbm [resolvable:$true] %s17_s25 }
   0x4   :  { %s716_s26 = smov 32   ;;  %s717_s27 = smov 2  }
   0x5   :  { %38 = dma.hbm_to_vmem [thread:$0]  %s31_s20, 256, %s33_s22, [#allocation5], %s716_s26, %s716_s26, %s717_s27  }
   0x6   :  { %s718_s28 = smov [#allocation2]   ;;  %s43_s7 = sshll.u32 %s848_s2, 4  ;;  %s44_s7 = int_to_ptr.hbm [resolvable:$true] %s43_s7 }
   0x7   :  { %s19_s29 = sshll.u32 %s718_s28, 4  ;;  %s56_s9 = sshll.u32 %s849_s3, 4  ;;  %s20_s29 = int_to_ptr.vmem [resolvable:$true] %s19_s29  ;;  %s57_s9 = int_to_ptr.hbm [resolvable:$true] %s56_s9 }
   0x8   :  { %25 = dma.hbm_to_vmem [thread:$0]  %s18_s25, 256, %s20_s29, [#allocation3], %s716_s26, %s716_s26, %s717_s27  }
   0x9   :  { %s719_s10 = smov [#allocation6]   ;;  %s720_s0 = smov [#allocation7]  }
   0xa   :  { %s45_s11 = sshll.u32 %s719_s10, 4  ;;  %s58_s12 = sshll.u32 %s720_s0, 4  ;;  %s46_s11 = int_to_ptr.vmem [resolvable:$true] %s45_s11  ;;  %s59_s12 = int_to_ptr.vmem [resolvable:$true] %s58_s12 }
   0xb   :  { %51 = dma.hbm_to_vmem [thread:$0]  %s44_s7, 256, %s46_s11, [#allocation5], %s716_s26, %s716_s26, %s717_s27  }
   0xc   :  { %s721_s13 = smov 64   ;;  %s722_s14 = smov 4  }
   0xd   :  { %64 = dma.hbm_to_vmem [thread:$0]  %s57_s9, 768, %s59_s12, [#allocation8], %s721_s13, %s721_s13, %s722_s14  }
   0xe   :  { %709 = dma.done.wait [#allocation3], 256  }
   0xf   :  { %710 = vsyncadd [#allocation3], 4294967040 }
  0x10   :  { %711 = dma.done.wait [#allocation5], 512  }
  0x11   :  { %712 = vsyncadd [#allocation5], 4294966784 }
  0x12   :  { %713 = dma.done.wait [#allocation8], 768  }
  0x13   :  { %714 = vsyncadd [#allocation8], 4294966528  ;;  %v597_v0 = vld [vmem:[#allocation7 + $0x8] sm:$0xff]  ;;  %v599_v1 = vld [vmem:[#allocation7 + $0x18] sm:$0xff]  ;;  %vm125_vm0 = vcmask 1041409   ;;  %vm128_vm1 = vcmask 1042434  }
  0x14   :  { %v596_v2 = vld [vmem:[#allocation7] sm:$0xff]  ;;  %vm131_vm2 = vcmask 1043459   ;;  %v598_v3 = vld [vmem:[#allocation7 + $0x10] sm:$0xff]  ;;  %vm134_vm3 = vcmask 1044484   ;;  %168 = vmatpush.bf16.msra.mxu0 %v597_v0  ;;  %234 = vmatpush.bf16.msra.mxu1 %v597_v0  ;;  %v93_v8 = vld [vmem:[#allocation2 + $0x8] sm:$0x1] }
  0x15   :  { %v89_v4 = vld [vmem:[#allocation2] sm:$0x1]  ;;  %v90_v5 = vld [vmem:[#allocation2 + $0x2] sm:$0x1]  ;;  %v91_v6 = vld [vmem:[#allocation2 + $0x4] sm:$0x1]  ;;  %322 = vmatpush.bf16.msra.mxu2 %v599_v1  ;;  %388 = vmatpush.bf16.msra.mxu3 %v599_v1  ;;  %v101_v16 = vpack.c.bf16 %v93_v8, %v93_v8 }
  0x16   :  { %v92_v7 = vld [vmem:[#allocation2 + $0x6] sm:$0x1]  ;;  %v97_v9 = vpack.c.bf16 %v89_v4, %v89_v4  ;;  %v98_v10 = vpack.c.bf16 %v90_v5, %v90_v5  ;;  %vm137_vm4 = vcmask 1045509   ;;  %v94_v11 = vld [vmem:[#allocation2 + $0xa] sm:$0x1]  ;;  %v99_v14 = vpack.c.bf16 %v91_v6, %v91_v6  ;;  %v601_v36 = vld [vmem:[#allocation7 + $0x28] sm:$0xff] }
  0x17   :  { %v95_v12 = vld [vmem:[#allocation2 + $0xc] sm:$0x1]  ;;  %v96_v13 = vld [vmem:[#allocation2 + $0xe] sm:$0x1]  ;;  %v100_v15 = vpack.c.bf16 %v92_v7, %v92_v7  ;;  %vm140_vm5 = vcmask 1046534   ;;  %v102_v17 = vpack.c.bf16 %v94_v11, %v94_v11  ;;  %vm143_vm6 = vcmask 1047559  }
  0x18   :  { %v103_v18 = vpack.c.bf16 %v95_v12, %v95_v12  ;;  %v104_v19 = vpack.c.bf16 %v96_v13, %v96_v13  ;;  %v116_v20 = vunpack.c.l.b16 %v97_v9  ;;  %v178_v21 = vld [vmem:[#allocation2 + $0x1] sm:$0x1]  ;;  %v179_v22 = vld [vmem:[#allocation2 + $0x3] sm:$0x1]  ;;  %v117_v23 = vunpack.c.l.b16 %v98_v10  ;;  %v180_v27 = vld [vmem:[#allocation2 + $0x5] sm:$0x1]  ;;  %169 = vmatpush.bf16.msra.mxu0 %v596_v2  ;;  %235 = vmatpush.bf16.msra.mxu1 %v596_v2 }
  0x19   :  { %v118_v24 = vunpack.c.l.b16 %v99_v14  ;;  %v119_v25 = vunpack.c.l.b16 %v100_v15  ;;  %v120_v26 = vunpack.c.l.b16 %v101_v16  ;;  %v181_v28 = vld [vmem:[#allocation2 + $0x7] sm:$0x1]  ;;  %v182_v29 = vld [vmem:[#allocation2 + $0x9] sm:$0x1]  ;;  %v121_v30 = vunpack.c.l.b16 %v102_v17  ;;  %v183_v33 = vld [vmem:[#allocation2 + $0xb] sm:$0x1]  ;;  %323 = vmatpush.bf16.msra.mxu2 %v598_v3  ;;  %389 = vmatpush.bf16.msra.mxu3 %v598_v3 }
  0x1a   :  { %v122_v31 = vunpack.c.l.b16 %v103_v18  ;;  %v123_v32 = vunpack.c.l.b16 %v104_v19  ;;  %v184_v34 = vld [vmem:[#allocation2 + $0xd] sm:$0x1]  ;;  %v186_v35 = vpack.c.bf16 %v178_v21, %v178_v21  ;;  %v124_v37 = vrot.slane %v117_v23, 7  ;;  %v185_v41 = vld [vmem:[#allocation2 + $0xf] sm:$0x1]  ;;  %v600_v46 = vld [vmem:[#allocation7 + $0x20] sm:$0xff] }
  0x1b   :  { %v127_v38 = vrot.slane %v118_v24, 6  ;;  %v130_v39 = vrot.slane %v119_v25, 5  ;;  %v133_v40 = vrot.slane %v120_v26, 4  ;;  %vm158_vm7 = vcmask 261120   ;;  %v251_v63 = vld [vmem:[#allocation4] sm:$0x1] }
  0x1c   :  { %v136_v42 = vrot.slane %v121_v30, 3  ;;  %v139_v43 = vrot.slane %v122_v31, 2  ;;  %v142_v44 = vrot.slane %v123_v32, 1  ;;  %v187_v45 = vpack.c.bf16 %v179_v22, %v179_v22  ;;  %476 = vmatpush.bf16.msrb.mxu0 %v601_v36  ;;  %542 = vmatpush.bf16.msrb.mxu1 %v601_v36  ;;  %v252_v0 = vld [vmem:[#allocation4 + $0x2] sm:$0x1] }
  0x1d   :  { %v126_v47 = vsel %vm125_vm0, %v124_v37, %v116_v20  ;;  %v188_v48 = vpack.c.bf16 %v180_v27, %v180_v27  ;;  %v189_v49 = vpack.c.bf16 %v181_v28, %v181_v28  ;;  %v190_v50 = vpack.c.bf16 %v182_v29, %v182_v29  ;;  %v253_v5 = vld [vmem:[#allocation4 + $0x4] sm:$0x1]  ;;  %v254_v6 = vld [vmem:[#allocation4 + $0x6] sm:$0x1]  ;;  %v255_v11 = vld [vmem:[#allocation4 + $0x8] sm:$0x1] }
  0x1e   :  { %v129_v51 = vsel %vm128_vm1, %v127_v38, %v126_v47  ;;  %v191_v52 = vpack.c.bf16 %v183_v33, %v183_v33  ;;  %v192_v53 = vpack.c.bf16 %v184_v34, %v184_v34  ;;  %v193_v54 = vpack.c.bf16 %v185_v41, %v185_v41  ;;  %v256_v16 = vld [vmem:[#allocation4 + $0xa] sm:$0x1]  ;;  %v257_v17 = vld [vmem:[#allocation4 + $0xc] sm:$0x1]  ;;  %v258_v21 = vld [vmem:[#allocation4 + $0xe] sm:$0x1] }
  0x1f   :  { %v132_v55 = vsel %vm131_vm2, %v130_v39, %v129_v51  ;;  %v202_v56 = vunpack.c.l.b16 %v186_v35  ;;  %v203_v57 = vunpack.c.l.b16 %v187_v45  ;;  %v204_v58 = vunpack.c.l.b16 %v188_v48  ;;  %v332_v35 = vld [vmem:[#allocation4 + $0x1] sm:$0x1]  ;;  %v333_v36 = vld [vmem:[#allocation4 + $0x3] sm:$0x1]  ;;  %v334_v37 = vld [vmem:[#allocation4 + $0x5] sm:$0x1] }
  0x20   :  { %v135_v59 = vsel %vm134_vm3, %v133_v40, %v132_v55  ;;  %v205_v60 = vunpack.c.l.b16 %v189_v49  ;;  %v206_v61 = vunpack.c.l.b16 %v190_v50  ;;  %v207_v62 = vunpack.c.l.b16 %v191_v52  ;;  %477 = vmatpush.bf16.msrb.mxu0 %v600_v46  ;;  %543 = vmatpush.bf16.msrb.mxu1 %v600_v46  ;;  %v337_v48 = vld [vmem:[#allocation4 + $0xb] sm:$0x1] }
  0x21   :  { %v138_v1 = vsel %vm137_vm4, %v136_v42, %v135_v59  ;;  %v208_v2 = vunpack.c.l.b16 %v192_v53  ;;  %v209_v3 = vunpack.c.l.b16 %v193_v54  ;;  %v210_v4 = vrot.slane %v203_v57, 7  ;;  %v335_v42 = vld [vmem:[#allocation4 + $0x7] sm:$0x1]  ;;  %v338_v53 = vld [vmem:[#allocation4 + $0xd] sm:$0x1] }
  0x22   :  { %v141_v7 = vsel %vm140_vm5, %v139_v43, %v138_v1  ;;  %v212_v8 = vrot.slane %v204_v58, 6  ;;  %v214_v9 = vrot.slane %v205_v60, 5  ;;  %v216_v10 = vrot.slane %v206_v61, 4  ;;  %v336_v43 = vld [vmem:[#allocation4 + $0x9] sm:$0x1] }
  0x23   :  { %v144_v12 = vsel %vm143_vm6, %v142_v44, %v141_v7  ;;  %v211_v13 = vsel %vm125_vm0, %v210_v4, %v202_v56  ;;  %v218_v14 = vrot.slane %v207_v62, 3  ;;  %v220_v15 = vrot.slane %v208_v2, 2  ;;  %v339_v58 = vld [vmem:[#allocation4 + $0xf] sm:$0x1] }
  0x24   :  { %v145_v18 = vpack.c.b16 %v144_v12, %v144_v12  ;;  %v213_v19 = vsel %vm128_vm1, %v212_v8, %v211_v13  ;;  %v222_v20 = vrot.slane %v209_v3, 1  ;;  %v259_v22 = vpack.c.bf16 %v251_v63, %v251_v63 }
  0x25   :  { %v215_v23 = vsel %vm131_vm2, %v214_v9, %v213_v19  ;;  %v260_v24 = vpack.c.bf16 %v252_v0, %v252_v0  ;;  %v261_v25 = vpack.c.bf16 %v253_v5, %v253_v5  ;;  %v262_v26 = vpack.c.bf16 %v254_v6, %v254_v6 }
  0x26   :  { %567 = vmatmul.msk.bf16.vlgmr.msra.gmra.mxu0 %vm158_vm7, %v145_v18  ;;  %v217_v27 = vsel %vm134_vm3, %v216_v10, %v215_v23  ;;  %v263_v28 = vpack.c.bf16 %v255_v11, %v255_v11  ;;  %v264_v29 = vpack.c.bf16 %v256_v16, %v256_v16  ;;  %v265_v30 = vpack.c.bf16 %v257_v17, %v257_v17  ;;  %v406_v16 = vld [vmem:[#allocation6 + $0x2] sm:$0x1]  ;;  %v407_v17 = vld [vmem:[#allocation6 + $0x4] sm:$0x1]  ;;  %v409_v23 = vld [vmem:[#allocation6 + $0x8] sm:$0x1] }
  0x27   :  { %v219_v31 = vsel %vm137_vm4, %v218_v14, %v217_v27  ;;  %v266_v32 = vpack.c.bf16 %v258_v21, %v258_v21  ;;  %v278_v33 = vunpack.c.l.b16 %v259_v22  ;;  %v279_v34 = vunpack.c.l.b16 %v260_v24  ;;  %v408_v22 = vld [vmem:[#allocation6 + $0x6] sm:$0x1] }
  0x28   :  { %v221_v38 = vsel %vm140_vm5, %v220_v15, %v219_v31  ;;  %v280_v39 = vunpack.c.l.b16 %v261_v25  ;;  %v281_v40 = vunpack.c.l.b16 %v262_v26  ;;  %v282_v41 = vunpack.c.l.b16 %v263_v28  ;;  %v405_v15 = vld [vmem:[#allocation6] sm:$0x1]  ;;  %v410_v28 = vld [vmem:[#allocation6 + $0xa] sm:$0x1] }
  0x29   :  { %v223_v44 = vsel %vm143_vm6, %v222_v20, %v221_v38  ;;  %v283_v45 = vunpack.c.l.b16 %v264_v29  ;;  %v284_v46 = vunpack.c.l.b16 %v265_v30  ;;  %v285_v47 = vunpack.c.l.b16 %v266_v32 }
  0x2a   :  { %v224_v49 = vpack.c.b16 %v223_v44, %v223_v44  ;;  %v286_v50 = vrot.slane %v279_v34, 7  ;;  %v288_v51 = vrot.slane %v280_v39, 6  ;;  %v290_v52 = vrot.slane %v281_v40, 5  ;;  %v412_v34 = vld [vmem:[#allocation6 + $0xe] sm:$0x1] }
  0x2b   :  { %v292_v54 = vrot.slane %v282_v41, 4  ;;  %v294_v55 = vrot.slane %v283_v45, 3  ;;  %v296_v56 = vrot.slane %v284_v46, 2  ;;  %v298_v57 = vrot.slane %v285_v47, 1 }
  0x2c   :  { %568 = vmatmul.msk.bf16.vlgmr.msra.gmra.mxu1 %vm158_vm7, %v224_v49  ;;  %v287_v59 = vsel %vm125_vm0, %v286_v50, %v278_v33  ;;  %v340_v60 = vpack.c.bf16 %v332_v35, %v332_v35  ;;  %v341_v61 = vpack.c.bf16 %v333_v36, %v333_v36  ;;  %v342_v62 = vpack.c.bf16 %v334_v37, %v334_v37  ;;  %v411_v33 = vld [vmem:[#allocation6 + $0xc] sm:$0x1] }
  0x2d   :  { %v289_v63 = vsel %vm128_vm1, %v288_v51, %v287_v59  ;;  %v343_v0 = vpack.c.bf16 %v335_v42, %v335_v42  ;;  %v344_v1 = vpack.c.bf16 %v336_v43, %v336_v43  ;;  %v345_v2 = vpack.c.bf16 %v337_v48, %v337_v48  ;;  %v486_v51 = vld [vmem:[#allocation6 + $0x1] sm:$0x1] }
  0x2e   :  { %v291_v3 = vsel %vm131_vm2, %v290_v52, %v289_v63  ;;  %v346_v4 = vpack.c.bf16 %v338_v53, %v338_v53  ;;  %v347_v5 = vpack.c.bf16 %v339_v58, %v339_v58  ;;  %v356_v6 = vunpack.c.l.b16 %v340_v60  ;;  %v489_v58 = vld [vmem:[#allocation6 + $0x7] sm:$0x1]  ;;  %v490_v63 = vld [vmem:[#allocation6 + $0x9] sm:$0x1] }
  0x2f   :  { %v293_v7 = vsel %vm134_vm3, %v292_v54, %v291_v3  ;;  %v357_v8 = vunpack.c.l.b16 %v341_v61  ;;  %v358_v9 = vunpack.c.l.b16 %v342_v62  ;;  %v359_v10 = vunpack.c.l.b16 %v343_v0  ;;  %v491_v0 = vld [vmem:[#allocation6 + $0xb] sm:$0x1] }
  0x30   :  { %v295_v11 = vsel %vm137_vm4, %v294_v55, %v293_v7  ;;  %v360_v12 = vunpack.c.l.b16 %v344_v1  ;;  %v361_v13 = vunpack.c.l.b16 %v345_v2  ;;  %v362_v14 = vunpack.c.l.b16 %v346_v4 }
  0x31   :  { %v297_v18 = vsel %vm140_vm5, %v296_v56, %v295_v11  ;;  %v363_v19 = vunpack.c.l.b16 %v347_v5  ;;  %v364_v20 = vrot.slane %v357_v8, 7  ;;  %v366_v21 = vrot.slane %v358_v9, 6  ;;  %v487_v56 = vld [vmem:[#allocation6 + $0x3] sm:$0x1]  ;;  %v492_v5 = vld [vmem:[#allocation6 + $0xd] sm:$0x1] }
  0x32   :  { %v299_v24 = vsel %vm143_vm6, %v298_v57, %v297_v18  ;;  %v368_v25 = vrot.slane %v359_v10, 5  ;;  %v370_v26 = vrot.slane %v360_v12, 4  ;;  %v372_v27 = vrot.slane %v361_v13, 3  ;;  %v488_v57 = vld [vmem:[#allocation6 + $0x5] sm:$0x1] }
  0x33   :  { %v300_v29 = vpack.c.b16 %v299_v24, %v299_v24  ;;  %v365_v30 = vsel %vm125_vm0, %v364_v20, %v356_v6  ;;  %v374_v31 = vrot.slane %v362_v14, 2  ;;  %v376_v32 = vrot.slane %v363_v19, 1  ;;  %v493_v9 = vld [vmem:[#allocation6 + $0xf] sm:$0x1] }
  0x34   :  { %v367_v35 = vsel %vm128_vm1, %v366_v21, %v365_v30  ;;  %v413_v36 = vpack.c.bf16 %v405_v15, %v405_v15  ;;  %v414_v37 = vpack.c.bf16 %v406_v16, %v406_v16  ;;  %v415_v38 = vpack.c.bf16 %v407_v17, %v407_v17 }
  0x35   :  { %579 = vmatmul.msk.bf16.vlgmr.msra.gmra.mxu2 %vm158_vm7, %v300_v29  ;;  %v369_v39 = vsel %vm131_vm2, %v368_v25, %v367_v35  ;;  %v416_v40 = vpack.c.bf16 %v408_v22, %v408_v22  ;;  %v417_v41 = vpack.c.bf16 %v409_v23, %v409_v23  ;;  %v418_v42 = vpack.c.bf16 %v410_v28, %v410_v28 }
  0x36   :  { %v371_v43 = vsel %vm134_vm3, %v370_v26, %v369_v39  ;;  %v419_v44 = vpack.c.bf16 %v411_v33, %v411_v33  ;;  %v420_v45 = vpack.c.bf16 %v412_v34, %v412_v34  ;;  %v432_v46 = vunpack.c.l.b16 %v413_v36 }
  0x37   :  { %v373_v47 = vsel %vm137_vm4, %v372_v27, %v371_v43  ;;  %v433_v48 = vunpack.c.l.b16 %v414_v37  ;;  %v434_v49 = vunpack.c.l.b16 %v415_v38  ;;  %v435_v50 = vunpack.c.l.b16 %v416_v40 }
  0x38   :  { %v375_v52 = vsel %vm140_vm5, %v374_v31, %v373_v47  ;;  %v436_v53 = vunpack.c.l.b16 %v417_v41  ;;  %v437_v54 = vunpack.c.l.b16 %v418_v42  ;;  %v438_v55 = vunpack.c.l.b16 %v419_v44 }
  0x39   :  { %v377_v59 = vsel %vm143_vm6, %v376_v32, %v375_v52  ;;  %v439_v60 = vunpack.c.l.b16 %v420_v45  ;;  %v440_v61 = vrot.slane %v433_v48, 7  ;;  %v442_v62 = vrot.slane %v434_v49, 6  ;;  %v610_v48 = vld [vmem:[%s850_s4] ss:$0 sm:$0xff] }
  0x3a   :  { %v378_v1 = vpack.c.b16 %v377_v59, %v377_v59  ;;  %v444_v2 = vrot.slane %v435_v50, 5  ;;  %v446_v3 = vrot.slane %v436_v53, 4  ;;  %v448_v4 = vrot.slane %v437_v54, 3 }
  0x3b   :  { %v441_v6 = vsel %vm125_vm0, %v440_v61, %v432_v46  ;;  %v450_v7 = vrot.slane %v438_v55, 2  ;;  %v452_v8 = vrot.slane %v439_v60, 1  ;;  %v494_v10 = vpack.c.bf16 %v486_v51, %v486_v51  ;;  %v612_v61 = vld [vmem:[%s850_s4 + $0x2] ss:$0 sm:$0xff] }
  0x3c   :  { %581 = vmatmul.msk.bf16.vlgmr.msra.gmra.mxu3 %vm158_vm7, %v378_v1  ;;  %v443_v11 = vsel %vm128_vm1, %v442_v62, %v441_v6  ;;  %v495_v12 = vpack.c.bf16 %v487_v56, %v487_v56  ;;  %v496_v13 = vpack.c.bf16 %v488_v57, %v488_v57  ;;  %v497_v14 = vpack.c.bf16 %v489_v58, %v489_v58  ;;  %v611_v57 = vld [vmem:[%s850_s4 + $0x1] ss:$0 sm:$0xff] }
  0x3d   :  { %v445_v15 = vsel %vm131_vm2, %v444_v2, %v443_v11  ;;  %v498_v16 = vpack.c.bf16 %v490_v63, %v490_v63  ;;  %v499_v17 = vpack.c.bf16 %v491_v0, %v491_v0  ;;  %v500_v18 = vpack.c.bf16 %v492_v5, %v492_v5 }
  0x3e   :  { %v447_v19 = vsel %vm134_vm3, %v446_v3, %v445_v15  ;;  %v501_v20 = vpack.c.bf16 %v493_v9, %v493_v9  ;;  %v510_v21 = vunpack.c.l.b16 %v494_v10  ;;  %v511_v22 = vunpack.c.l.b16 %v495_v12 }
  0x3f   :  { %v449_v23 = vsel %vm137_vm4, %v448_v4, %v447_v19  ;;  %v512_v24 = vunpack.c.l.b16 %v496_v13  ;;  %v513_v25 = vunpack.c.l.b16 %v497_v14  ;;  %v514_v26 = vunpack.c.l.b16 %v498_v16 }
  0x40   :  { %v451_v27 = vsel %vm140_vm5, %v450_v7, %v449_v23  ;;  %v515_v28 = vunpack.c.l.b16 %v499_v17  ;;  %v516_v29 = vunpack.c.l.b16 %v500_v18  ;;  %v517_v30 = vunpack.c.l.b16 %v501_v20 }
  0x41   :  { %v453_v31 = vsel %vm143_vm6, %v452_v8, %v451_v27  ;;  %v518_v32 = vrot.slane %v511_v22, 7  ;;  %v520_v33 = vrot.slane %v512_v24, 6  ;;  %v522_v34 = vrot.slane %v513_v25, 5 }
  0x42   :  { %v454_v35 = vpack.c.b16 %v453_v31, %v453_v31  ;;  %v524_v36 = vrot.slane %v514_v26, 4  ;;  %v526_v38 = vrot.slane %v515_v28, 3  ;;  %v528_v40 = vrot.slane %v516_v29, 2 }
  0x43   :  { %v519_v37 = vsel %vm125_vm0, %v518_v32, %v510_v21  ;;  %v530_v42 = vrot.slane %v517_v30, 1  ;;  %vm176_vm8 = vcmask 257024  }
  0x44   :  { %592 = vmatmul.msk.bf16.vlgmr.msrb.gmra.mxu0 %vm158_vm7, %v454_v35  ;;  %v521_v39 = vsel %vm128_vm1, %v520_v33, %v519_v37 }
  0x45   :  { %v523_v41 = vsel %vm131_vm2, %v522_v34, %v521_v39 }
  0x46   :  { %v525_v43 = vsel %vm134_vm3, %v524_v36, %v523_v41 }
  0x47   :  { %v527_v44 = vsel %vm137_vm4, %v526_v38, %v525_v43 }
  0x48   :  { %v529_v45 = vsel %vm140_vm5, %v528_v40, %v527_v44 }
  0x49   :  { %v531_v46 = vsel %vm143_vm6, %v530_v42, %v529_v45 }
  0x4a   :  { %v532_v47 = vpack.c.b16 %v531_v46, %v531_v46 }
  0x4c   :  { %594 = vmatmul.msk.bf16.vlgmr.msrb.gmra.mxu1 %vm158_vm7, %v532_v47 }
  0xa3   :  { %v171_v49 = vpop.f32.mrf.mxu0 }
  0xa4   :  { %v172_v50 = vadd.f32 %v610_v48, %v171_v49 }
  0xa6   :  { %v175_v51 = vpack.c.bf16 %v172_v50, %v172_v50 }
  0xa8   :  { %177 = vst.msk [vmem:[%s851_s5] sm:$0xf] %vm176_vm8, %v175_v51 }
  0xa9   :  { %v237_v52 = vpop.f32.mrf.mxu1 }
  0xaa   :  { %v238_v53 = vadd.f32 %v610_v48, %v237_v52 }
  0xab   :  { %v173_v54 = vpop.f32.mrf.mxu0 }
  0xac   :  { %v241_v55 = vpack.c.bf16 %v238_v53, %v238_v53 }
  0xae   :  { %569 = vst.msk [vmem:[%s851_s5 + $0x4] sm:$0xf] %vm176_vm8, %v241_v55 }
  0xb1   :  { %v239_v56 = vpop.f32.mrf.mxu1 }
  0xb8   :  { %v325_v58 = vpop.f32.mrf.mxu2 }
  0xb9   :  { %v326_v59 = vadd.f32 %v611_v57, %v325_v58 }
  0xbb   :  { %v329_v60 = vpack.c.bf16 %v326_v59, %v326_v59 }
  0xbd   :  { %580 = vst.msk [vmem:[%s851_s5 + $0x8] sm:$0xf] %vm176_vm8, %v329_v60 }
  0xbf   :  { %v391_v62 = vpop.f32.mrf.mxu3 }
  0xc0   :  { %v392_v63 = vadd.f32 %v611_v57, %v391_v62  ;;  %v327_v0 = vpop.f32.mrf.mxu2 }
  0xc1   :  { %v479_v1 = vpop.f32.mrf.mxu0 }
  0xc2   :  { %v395_v2 = vpack.c.bf16 %v392_v63, %v392_v63  ;;  %v480_v3 = vadd.f32 %v612_v61, %v479_v1 }
  0xc4   :  { %582 = vst.msk [vmem:[%s851_s5 + $0xc] sm:$0xf] %vm176_vm8, %v395_v2  ;;  %v483_v4 = vpack.c.bf16 %v480_v3, %v480_v3 }
  0xc6   :  { %593 = vst.msk [vmem:[%s851_s5 + $0x10] sm:$0xf] %vm176_vm8, %v483_v4 }
  0xc7   :  { %v393_v5 = vpop.f32.mrf.mxu3 }
  0xc9   :  { %v545_v6 = vpop.f32.mrf.mxu1  ;;  %v481_v7 = vpop.f32.mrf.mxu0 }
  0xca   :  { %v546_v8 = vadd.f32 %v612_v61, %v545_v6 }
  0xcc   :  { %v549_v9 = vpack.c.bf16 %v546_v8, %v546_v8 }
  0xce   :  { %595 = vst.msk [vmem:[%s851_s5 + $0x14] sm:$0xf] %vm176_vm8, %v549_v9 }
  0xd1   :  { %v547_v10 = vpop.f32.mrf.mxu1 }
  0xd2   :  { %556 = vsyncpa [#allocation3], 1 }
  0xd3   :  { %557 = vsyncpa [#allocation5], 1 }
  0xd4   :  { %558 = vsyncpa [#allocation8], 1 }

// kernel: multi_head_attention.4
= control target key start
LH: loop header
LB: loop body
LE: loop exit
PB: predicated region body
PF: predicated region fallthrough
CT: control target
= control target key end

     0   :  { %s925_s12 = smov 0   ;;  %s927_s13 = smov 0   ;;  %s1056_s0 = inlined_call_operand.vmem [shape: bf16[3,2,8,32], index: 0, kind: input, shape index: {}, may-alias: {0,1,2}]   ;;  %s1057_s1 = inlined_call_operand.vmem [shape: bf16[3,2,8,32], index: 1, kind: input, shape index: {}, may-alias: {0,1,2}]   ;;  %s1058_s2 = inlined_call_operand.vmem [shape: bf16[3,2,8,32], index: 2, kind: input, shape index: {}, may-alias: {0,1,2}]   ;;  %s1059_s3 = inlined_call_operand.vmem [shape: bf16[2,8,32], index: 3, kind: output, shape index: {}]  }
   0x1   :  { %s929_s14 = smov 0  }
   0x2 LB: > { %s32_s15 = sadd.s32 1, %s890_s13  ;;  %p795_p0 = scmp.ge.s32.totalorder %s894_s14, 1  ;;  %s894_s14 = sphi %s929_s14, %s13_s14   ;;  %s890_s13 = sphi %s927_s13, %s1061_s13   ;;  %s886_s12 = sphi %s925_s12, %s1060_s12  }
   0x3   : > { %p34_p1 = scmp.ge.s32.totalorder %s32_s15, 2  ;;  %p192_p2 = scmp.lt.s32.totalorder %s894_s14, 3 }
   0x5   : > { %s1063_s15 = smov (%p34_p1, %s32_s15), 0  ;;  %p193_p3 = pnand %p795_p0, %p192_p2 }
   0x6   : > { %p236_p4 = scmp.lt.s32.totalorder (!%p193_p3), %s886_s12, 1  ;;  %s897_s23 = smov (!%p193_p3), 112  }
   0x7   : > { %196 = sbr.rel (%p193_p3) target bundleno = 1130 (0x46a), region = 32  ;;  %s898_s24 = smov (!%p193_p3), 104  }
   0x8   : > { %s899_s25 = smov (!%p193_p3), 120   ;;  %s902_s5 = smov (!%p193_p3), 8  }
   0x9   : > { %s903_s6 = smov (!%p193_p3), 24   ;;  %s904_s7 = smov (!%p193_p3), 16  }
   0xc   : > { %s1065_s12 = smov (!%p236_p4, %s886_s12), 1  ;;  %vm280_vm0 = vcmask 64512   ;;  %vm271_vm1 = vcmask 7168   ;;  %v896_v3 = vmov -inf   ;;  %v900_v11 = vmov 0  }
   0xd   : > { %s943_s16 = sshll.u32 %s1065_s12, 2  ;;  %272 = vst.msk [vmem:[#allocation2] sm:$0xff] %vm271_vm1, %v896_v3  ;;  %845 = vset.pattern.permute.xlu1 %v900_v11  ;;  %846 = vset.pattern.permute.xlu2 %v900_v11  ;;  %v901_v12 = vmov 0.0   ;;  %vm343_vm2 = vcmask 1043456   ;;  %vm628_vm3 = vcmask 60416   ;;  %vm644_vm4 = vcmask 126016  }
   0xe   : > { %s733_s19 = scalar_lea.vmem %s1057_s1, %s943_s16  ;;  %s242_s22 = scalar_lea.vmem %s1056_s0, %s943_s16  ;;  %273 = vst.msk [vmem:[#allocation2 + $0x8] sm:$0xff] %vm271_vm1, %v896_v3  ;;  %847 = vset.pattern.permute.xlu0 %v900_v11  ;;  %vm660_vm5 = vcmask 191616   ;;  %vm676_vm6 = vcmask 257216  }
   0xf   : > { %v800_v0 = vld [vmem:[%s733_s19 + $0x8] sm:$0xf]  ;;  %v285_v2 = vld [vmem:[%s242_s22] sm:$0xf]  ;;  %274 = vst.msk [vmem:[#allocation2 + $0x10] sm:$0xff] %vm271_vm1, %v896_v3  ;;  %s737_s28 = scalar_lea.vmem %s1058_s2, %s943_s16  ;;  %s1040_s4 = scalar_lea.vmem %s1059_s3, %s943_s16 }
  0x10   : > { %v293_v1 = vsel %vm280_vm0, %v800_v0, 0  ;;  %275 = vst.msk [vmem:[#allocation2 + $0x18] sm:$0xff] %vm271_vm1, %v896_v3  ;;  %v369_v4 = vunpack.c.l.b16 %v800_v0  ;;  %v364_v9 = vunpack.c.l.b16 %v285_v2  ;;  %v801_v20 = vld [vmem:[%s737_s28 + $0x10] sm:$0xf] }
  0x11   : > { %302 = vmatpush.bf16.xpose.msra.mxu0 %v293_v1  ;;  %276 = vst.msk [vmem:[#allocation3] sm:$0xff] %vm271_vm1, %v901_v12  ;;  %v345_v21 = vsel %vm343_vm2, %v801_v20, 0  ;;  %v427_v43 = vunpack.c.l.b16 %v801_v20 }
  0x12   : > { %v370_v5 = vpack.c.b16 %v369_v4, %v369_v4  ;;  %v365_v10 = vpack.c.b16 %v364_v9, %v364_v9  ;;  %277 = vst.msk [vmem:[#allocation3 + $0x8] sm:$0xff] %vm271_vm1, %v901_v12  ;;  %354 = vmatpush.bf16.msra.mxu1 %v345_v21 }
  0x13   : > { %278 = vst.msk [vmem:[#allocation3 + $0x10] sm:$0xff] %vm271_vm1, %v901_v12  ;;  %v428_v44 = vpack.c.b16 %v427_v43, %v427_v43 }
  0x14   : > { %455 = vrot.lane.b32.xlu2 %v370_v5, %s897_s23  ;;  %279 = vst.msk [vmem:[#allocation3 + $0x18] sm:$0xff] %vm271_vm1, %v901_v12  ;;  %v972_v13 = vld [vmem:[#allocation2] sm:$0xff] }
  0x15   : > { %281 = vst.msk [vmem:[#allocation4] sm:$0xff] %vm280_vm0, %v901_v12  ;;  %v393_v51 = vld [vmem:[#allocation2 + $0x8] sm:$0xff] }
  0x16   : > { %282 = vst.msk [vmem:[#allocation4 + $0x8] sm:$0xff] %vm280_vm0, %v901_v12  ;;  %v477_v54 = vld [vmem:[#allocation2 + $0x10] sm:$0xff] }
  0x17   : > { %283 = vst.msk [vmem:[#allocation4 + $0x10] sm:$0xff] %vm280_vm0, %v901_v12  ;;  %v558_v47 = vld [vmem:[#allocation2 + $0x18] sm:$0xff] }
  0x18   : > { %802 = vmatmul.msk.bf16.vlgmr.msra.gmra.mxu0 %vm280_vm0, %v285_v2  ;;  %284 = vst.msk [vmem:[#allocation4 + $0x18] sm:$0xff] %vm280_vm0, %v901_v12  ;;  %v324_v1 = vld [vmem:[#allocation3] sm:$0xff] }
  0x1c   : > { %536 = vrot.lane.b32.xlu2 %v370_v5, %s898_s24 }
  0x24   : > { %534 = vrot.lane.b32.xlu2 %v365_v10, %s898_s24 }
  0x6e   : > { %v456_v19 = vpop.permute.xlu2 %455 }
  0x6f   : > { %v461_v22 = vsel %vm280_vm0, %v456_v19, 0 }
  0x70   : > { %470 = vmatpush.bf16.xpose.msrb.mxu1 %v461_v22  ;;  %v332_v22 = vld [vmem:[#allocation4] sm:$0xff] }
  0x76   : > { %v537_v23 = vpop.permute.xlu2 %536 }
  0x77   : > { %v542_v24 = vsel %vm280_vm0, %v537_v23, 0 }
  0x78   : > { %551 = vmatpush.bf16.xpose.msrb.mxu0 %v542_v24 }
  0x7e   : > { %v535_v25 = vpop.permute.xlu2 %534 }
  0x7f   : > { %808 = vmatmul.msk.bf16.vlgmr.msrb.gmra.mxu0 %vm280_vm0, %v535_v25 }
  0x95   : > { %v304_v6 = vpop.f32.mrf.mxu0 }
  0x96   : > { %v309_v7 = vsel %vm280_vm0, %v304_v6, -inf }
  0x97   : > { %310 = vmax.xlane.f32.xlu0 %v309_v7 }
  0x9d   : > { %v306_v8 = vpop.f32.mrf.mxu0 }
  0xab   : > { %371 = vrot.lane.b32.xlu0 %v370_v5, %s899_s25 }
  0xfc   : > { %v996_v33 = vpop.f32.mrf.mxu0 }
  0xfd   : > { %v559_v34 = vsel %vm280_vm0, %v996_v33, -inf }
  0xfe   : > { %560 = vmax.xlane.f32.xlu0 %v559_v34 }
 0x104   : > { %v555_v35 = vpop.f32.mrf.mxu0 }
 0x10a   : > { %v311_v14 = vpop.xlane.xlu0 %310 }
 0x10b   : > { %v975_v15 = vmax.f32 %v972_v13, %v311_v14 }
 0x10d   : > { %v313_v16 = vsub.f32 %v972_v13, %v975_v15  ;;  %362 = vst.msk [vmem:[#allocation2] sm:$0xff] %vm271_vm1, %v975_v15  ;;  %318 = vperm.xlu1 %845, %v975_v15  }
 0x10f   : > { %v314_v56 = vmul.f32 1.442695, %v313_v16 }
 0x115   : > { %366 = vrot.lane.b32.xlu1 %v365_v10, %s899_s25 }
 0x11d   : > { %453 = vrot.lane.b32.xlu1 %v365_v10, %s897_s23  ;;  %v372_v17 = vpop.permute.xlu0 %371 }
 0x11e   : > { %v377_v18 = vsel %vm280_vm0, %v372_v17, 0 }
 0x11f   : > { %386 = vmatpush.bf16.xpose.msra.mxu2 %v377_v18 }
 0x171   : > { %v561_v48 = vpop.xlane.xlu0 %560 }
 0x172   : > { %v562_v49 = vmax.f32 %v558_v47, %v561_v48 }
 0x174   : > { %v563_v50 = vsub.f32 %v558_v47, %v562_v49  ;;  %614 = vst.msk [vmem:[#allocation2 + $0x18] sm:$0xff] %vm271_vm1, %v562_v49 }
 0x176   : > { %v564_v21 = vmul.f32 1.442695, %v563_v50 }
 0x17f   : > { %v319_v26 = vpop.permute.xlu1 %318 }
 0x180   : > { %v321_v27 = vsub.f32 %v304_v6, %v319_v26 }
 0x182   : > { %v322_v28 = vmul.f32 1.442695, %v321_v27 }
 0x184   : > { %848 = vpow2.f32 %v322_v28 }
 0x185   : > { %850 = vpow2.f32 %v314_v56 }
 0x187   : > { %v367_v29 = vpop.permute.xlu1 %366 }
 0x188   : > { %804 = vmatmul.msk.bf16.vlgmr.msra.gmra.mxu2 %vm280_vm0, %v367_v29 }
 0x18a   : > { %v849_v30 = vpop.eup %848 }
 0x18b   : > { %v339_v31 = vpack.c.bf16 %v849_v30, %v849_v30  ;;  %v326_v46 = vsel %vm280_vm0, %v849_v30, 0.0  ;;  %v851_v61 = vpop.eup %850 }
 0x18c   : > { %v325_v3 = vmul.f32 %v851_v61, %v324_v1 }
 0x18d   : > { %803 = vmatmul.msk.bf16.vlgmr.msra.gmra.mxu1 %vm280_vm0, %v339_v31 }
 0x18f   : > { %v454_v32 = vpop.permute.xlu1 %453 }
 0x19d   : > { %806 = vmatmul.msk.bf16.vlgmr.msrb.gmra.mxu1 %vm280_vm0, %v454_v32 }
 0x20a   : > { %v1000_v36 = vpop.f32.mrf.mxu1 }
 0x20b   : > { %v388_v37 = vpop.f32.mrf.mxu2 }
 0x20c   : > { %v394_v38 = vsel %vm280_vm0, %v388_v37, -inf }
 0x20d   : > { %395 = vmax.xlane.f32.xlu1 %v394_v38 }
 0x212   : > { %v358_v39 = vpop.f32.mrf.mxu1 }
 0x213   : > { %v390_v40 = vpop.f32.mrf.mxu2 }
 0x21a   : > { %v1003_v41 = vpop.f32.mrf.mxu1 }
 0x21b   : > { %v478_v42 = vsel %vm280_vm0, %v1003_v41, -inf }
 0x21c   : > { %479 = vmax.xlane.f32.xlu2 %v478_v42 }
 0x222   : > { %v474_v45 = vpop.f32.mrf.mxu1 }
 0x226   : > { %429 = vrot.lane.b32.xlu1 %v428_v44, %s899_s25 }
 0x22e   : > { %510 = vrot.lane.b32.xlu1 %v428_v44, %s897_s23 }
 0x258   : > { %327 = vadd.xlane.f32.xlu1 %v326_v46  ;;  %v418_v46 = vld [vmem:[#allocation4 + $0x8] sm:$0xff] }
 0x280   : > { %v396_v52 = vpop.xlane.xlu1 %395 }
 0x281   : > { %v397_v53 = vmax.f32 %v393_v51, %v396_v52 }
 0x283   : > { %452 = vst.msk [vmem:[#allocation2 + $0x8] sm:$0xff] %vm271_vm1, %v397_v53  ;;  %403 = vperm.xlu2 %846, %v397_v53   ;;  %v398_v59 = vsub.f32 %v393_v51, %v397_v53  ;;  %v583_v53 = vld [vmem:[#allocation4 + $0x18] sm:$0xff] }
 0x285   : > { %v399_v60 = vmul.f32 1.442695, %v398_v59 }
 0x287   : > { %852 = vpow2.f32 %v399_v60 }
 0x28b   : > { %568 = vperm.xlu2 %846, %v562_v49  }
 0x28d   : > { %v853_v62 = vpop.eup %852 }
 0x28f   : > { %v480_v55 = vpop.xlane.xlu2 %479 }
 0x290   : > { %v481_v57 = vmax.f32 %v477_v54, %v480_v55 }
 0x292   : > { %v482_v58 = vsub.f32 %v477_v54, %v481_v57  ;;  %533 = vst.msk [vmem:[#allocation2 + $0x10] sm:$0xff] %vm271_vm1, %v481_v57  ;;  %487 = vperm.xlu0 %847, %v481_v57  }
 0x293   : > { %591 = vrot.lane.b32.xlu2 %v428_v44, %s898_s24 }
 0x294   : > { %v483_v27 = vmul.f32 1.442695, %v482_v58 }
 0x298   : > { %v430_v63 = vpop.permute.xlu1 %429 }
 0x299   : > { %v435_v2 = vsel %vm343_vm2, %v430_v63, 0 }
 0x29a   : > { %444 = vmatpush.bf16.msra.mxu3 %v435_v2 }
 0x29b   : > { %335 = vperm.xlu2 %846, %v851_v61   ;;  %v494_v61 = vld [vmem:[#allocation3 + $0x10] sm:$0xff] }
 0x2a0   : > { %v511_v0 = vpop.permute.xlu1 %510 }
 0x2a1   : > { %v516_v15 = vsel %vm343_vm2, %v511_v0, 0 }
 0x2a2   : > { %525 = vmatpush.bf16.msrb.mxu3 %v516_v15 }
 0x2a3   : > { %421 = vperm.xlu2 %846, %v853_v62  }
 0x2cb   : > { %v328_v4 = vpop.xlane.xlu1 %327 }
 0x2cc   : > { %v329_v5 = vadd.f32 %v328_v4, %v325_v3 }
 0x2ce   : > { %331 = vst.msk [vmem:[#allocation3] sm:$0xff] %vm271_vm1, %v329_v5 }
 0x2d5   : > { %v618_v35 = vld [vmem:[#allocation3] sm:$0xff] }
 0x2dd   : > { %v404_v6 = vpop.permute.xlu2 %403 }
 0x2de   : > { %v406_v7 = vsub.f32 %v388_v37, %v404_v6  ;;  %v410_v37 = vld [vmem:[#allocation3 + $0x8] sm:$0xff]  ;;  %v502_v6 = vld [vmem:[#allocation4 + $0x10] sm:$0xff] }
 0x2df   : > { %v411_v38 = vmul.f32 %v853_v62, %v410_v37 }
 0x2e0   : > { %v407_v8 = vmul.f32 1.442695, %v406_v7 }
 0x2e2   : > { %854 = vpow2.f32 %v407_v8 }
 0x2e5   : > { %v569_v9 = vpop.permute.xlu2 %568 }
 0x2e6   : > { %v571_v10 = vsub.f32 %v996_v33, %v569_v9 }
 0x2e8   : > { %v855_v11 = vpop.eup %854  ;;  %v572_v12 = vmul.f32 1.442695, %v571_v10 }
 0x2e9   : > { %v412_v13 = vsel %vm280_vm0, %v855_v11, 0.0  ;;  %v425_v14 = vpack.c.bf16 %v855_v11, %v855_v11 }
 0x2ea   : > { %856 = vpow2.f32 %v572_v12  ;;  %413 = vadd.xlane.f32.xlu0 %v412_v13 }
 0x2eb   : > { %805 = vmatmul.msk.bf16.vlgmr.msra.gmra.mxu3 %vm280_vm0, %v425_v14  ;;  %858 = vpow2.f32 %v564_v21 }
 0x2ec   : > { %860 = vpow2.f32 %v483_v27 }
 0x2ed   : > { %v592_v16 = vpop.permute.xlu2 %591 }
 0x2ee   : > { %v597_v17 = vsel %vm343_vm2, %v592_v16, 0 }
 0x2ef   : > { %606 = vmatpush.bf16.msrb.mxu2 %v597_v17 }
 0x2f0   : > { %v857_v18 = vpop.eup %856 }
 0x2f1   : > { %v577_v19 = vsel %vm280_vm0, %v857_v18, 0.0  ;;  %v590_v20 = vpack.c.bf16 %v857_v18, %v857_v18  ;;  %v859_v26 = vpop.eup %858 }
 0x2f2   : > { %578 = vadd.xlane.f32.xlu1 %v577_v19  ;;  %v861_v31 = vpop.eup %860 }
 0x2f3   : > { %809 = vmatmul.msk.bf16.vlgmr.msrb.gmra.mxu2 %vm280_vm0, %v590_v20  ;;  %v495_v62 = vmul.f32 %v861_v31, %v494_v61 }
 0x2f5   : > { %v336_v23 = vpop.permute.xlu2 %335 }
 0x2f6   : > { %v338_v24 = vmul.f32 %v336_v23, %v332_v22 }
 0x2f8   : > { %v360_v25 = vadd.f32 %v1000_v36, %v338_v24 }
 0x2fa   : > { %361 = vst.msk [vmem:[#allocation4] sm:$0xff] %vm280_vm0, %v360_v25 }
 0x2fd   : > { %v422_v47 = vpop.permute.xlu2 %421 }
 0x2fe   : > { %586 = vperm.xlu0 %847, %v859_v26   ;;  %v424_v48 = vmul.f32 %v422_v47, %v418_v46 }
 0x301   : > { %v620_v1 = vld [vmem:[#allocation4] sm:$0xff] }
 0x304   : > { %v488_v28 = vpop.permute.xlu0 %487 }
 0x305   : > { %v490_v29 = vsub.f32 %v1003_v41, %v488_v28  ;;  %v575_v41 = vld [vmem:[#allocation3 + $0x18] sm:$0xff] }
 0x306   : > { %v576_v42 = vmul.f32 %v859_v26, %v575_v41 }
 0x307   : > { %v491_v30 = vmul.f32 1.442695, %v490_v29 }
 0x309   : > { %862 = vpow2.f32 %v491_v30 }
 0x30a   : > { %864 = vrcp.f32 %v618_v35 }
 0x30b   : > { %505 = vperm.xlu1 %845, %v861_v31  }
 0x30f   : > { %v863_v32 = vpop.eup %862 }
 0x310   : > { %v496_v33 = vsel %vm280_vm0, %v863_v32, 0.0  ;;  %v509_v34 = vpack.c.bf16 %v863_v32, %v863_v32  ;;  %v865_v36 = vpop.eup %864 }
 0x311   : > { %497 = vadd.xlane.f32.xlu2 %v496_v33 }
 0x312   : > { %807 = vmatmul.msk.bf16.vlgmr.msrb.gmra.mxu3 %vm280_vm0, %v509_v34 }
 0x329   : > { %623 = vperm.xlu2 %846, %v865_v36  }
 0x35d   : > { %v414_v39 = vpop.xlane.xlu0 %413 }
 0x35e   : > { %v415_v40 = vadd.f32 %v414_v39, %v411_v38 }
 0x360   : > { %416 = vst.msk [vmem:[#allocation3 + $0x8] sm:$0xff] %vm271_vm1, %v415_v40 }
 0x365   : > { %v579_v43 = vpop.xlane.xlu1 %578 }
 0x366   : > { %v580_v44 = vadd.f32 %v579_v43, %v576_v42 }
 0x367   : > { %v630_v45 = vld [vmem:[#allocation3 + $0x8] sm:$0xff] }
 0x368   : > { %581 = vst.msk [vmem:[#allocation3 + $0x18] sm:$0xff] %vm271_vm1, %v580_v44  ;;  %866 = vrcp.f32 %v630_v45 }
 0x36e   : > { %v867_v49 = vpop.eup %866  ;;  %v446_v50 = vpop.f32.mrf.mxu3 }
 0x36f   : > { %v450_v51 = vadd.f32 %v446_v50, %v424_v48  ;;  %635 = vperm.xlu0 %847, %v867_v49   ;;  %v662_v52 = vld [vmem:[#allocation3 + $0x18] sm:$0xff] }
 0x370   : > { %868 = vrcp.f32 %v662_v52  ;;  %v587_v54 = vpop.permute.xlu0 %586 }
 0x371   : > { %451 = vst.msk [vmem:[#allocation4 + $0x8] sm:$0xff] %vm280_vm0, %v450_v51  ;;  %v589_v55 = vmul.f32 %v587_v54, %v583_v53 }
 0x376   : > { %v869_v56 = vpop.eup %868  ;;  %v448_v57 = vpop.f32.mrf.mxu3 }
 0x377   : > { %v608_v58 = vpop.f32.mrf.mxu2  ;;  %667 = vperm.xlu0 %847, %v869_v56  }
 0x378   : > { %v612_v59 = vadd.f32 %v608_v58, %v589_v55  ;;  %v632_v13 = vld [vmem:[#allocation4 + $0x8] sm:$0xff] }
 0x37a   : > { %613 = vst.msk [vmem:[#allocation4 + $0x18] sm:$0xff] %vm280_vm0, %v612_v59 }
 0x37d   : > { %v506_v7 = vpop.permute.xlu1 %505 }
 0x37e   : > { %v508_v8 = vmul.f32 %v506_v7, %v502_v6 }
 0x37f   : > { %v610_v60 = vpop.f32.mrf.mxu2 }
 0x381   : > { %v664_v17 = vld [vmem:[#allocation4 + $0x18] sm:$0xff] }
 0x384   : > { %v498_v63 = vpop.xlane.xlu2 %497 }
 0x385   : > { %v499_v0 = vadd.f32 %v498_v63, %v495_v62 }
 0x387   : > { %500 = vst.msk [vmem:[#allocation3 + $0x10] sm:$0xff] %vm271_vm1, %v499_v0 }
 0x38c   : > { %v624_v2 = vpop.permute.xlu2 %623 }
 0x38d   : > { %v626_v3 = vmul.f32 %v624_v2, %v620_v1 }
 0x38e   : > { %v646_v4 = vld [vmem:[#allocation3 + $0x10] sm:$0xff] }
 0x38f   : > { %v627_v5 = vpack.c.bf16 %v626_v3, %v626_v3  ;;  %870 = vrcp.f32 %v646_v4 }
 0x391   : > { %629 = vst.msk [vmem:[%s1040_s4] sm:$0xf] %vm628_vm3, %v627_v5 }
 0x395   : > { %v871_v9 = vpop.eup %870  ;;  %v527_v10 = vpop.f32.mrf.mxu3 }
 0x396   : > { %v531_v11 = vadd.f32 %v527_v10, %v508_v8  ;;  %651 = vperm.xlu1 %845, %v871_v9  }
 0x398   : > { %532 = vst.msk [vmem:[#allocation4 + $0x10] sm:$0xff] %vm280_vm0, %v531_v11 }
 0x39d   : > { %v529_v12 = vpop.f32.mrf.mxu3 }
 0x39f   : > { %v648_v21 = vld [vmem:[#allocation4 + $0x10] sm:$0xff] }
 0x3e1   : > { %v636_v14 = vpop.permute.xlu0 %635 }
 0x3e2   : > { %v638_v15 = vmul.f32 %v636_v14, %v632_v13 }
 0x3e4   : > { %v639_v16 = vpack.c.bf16 %v638_v15, %v638_v15 }
 0x3e6   : > { %641 = vrot.lane.b32.xlu1 %v639_v16, %s902_s5 }
 0x3e9   : > { %v668_v18 = vpop.permute.xlu0 %667 }
 0x3ea   : > { %v670_v19 = vmul.f32 %v668_v18, %v664_v17 }
 0x3ec   : > { %v671_v20 = vpack.c.bf16 %v670_v19, %v670_v19 }
 0x3ee   : > { %673 = vrot.lane.b32.xlu0 %v671_v20, %s903_s6 }
 0x408   : > { %v652_v22 = vpop.permute.xlu1 %651 }
 0x409   : > { %v654_v23 = vmul.f32 %v652_v22, %v648_v21 }
 0x40b   : > { %v655_v24 = vpack.c.bf16 %v654_v23, %v654_v23 }
 0x40d   : > { %657 = vrot.lane.b32.xlu2 %v655_v24, %s904_s7 }
 0x458   : > { %v642_v25 = vpop.permute.xlu1 %641 }
 0x459   : > { %645 = vst.msk [vmem:[%s1040_s4] sm:$0xf] %vm644_vm4, %v642_v25 }
 0x460   : > { %v674_v27 = vpop.permute.xlu0 %673 }
 0x467   : > { %v658_v26 = vpop.permute.xlu2 %657 }
 0x468   : > { %661 = vst.msk [vmem:[%s1040_s4] sm:$0xf] %vm660_vm5, %v658_v26 }
 0x469   : > { %677 = vst.msk [vmem:[%s1040_s4] sm:$0xf] %vm676_vm6, %v674_v27 }
 0x46a PF: > { %s13_s14 = sadd.s32 1, %s894_s14   ;;  %s1060_s12 = smov %s890_s13 }
 0x46b   : > { %p10_p5 = scmp.ge.s32.totalorder %s13_s14, 4   ;;  %s1061_s13 = smov %s1063_s15 }
 0x46d   :  { %12 = sbr.rel (!%p10_p5) target bundleno = 2 (0x2), region = 85 }

</bundles_post_ra>
